<compile_context>
chip_gen: v6e
topology: v6e:2x2x1
jax: 0.10.0
libtpu: 0.0.40
codegen_flags: <defaults>
</compile_context>

<pallas_src>
import math

import jax
import jax.numpy as jnp
from jax.experimental import pallas as pl
from jax.experimental.pallas import tpu as pltpu

F32 = jnp.float32
BF16 = jnp.bfloat16
BN_EPS = 1e-5
BLOCK_EXPANSION = 1  # BasicBlock-style block


def _round_up(x, m):
    return (x + m - 1) // m * m


def _triple(v):
    return (v, v, v) if isinstance(v, int) else tuple(v)


def _vmem_limit_bytes():
    """Per-generation scoped VMEM limit: ~3/4 of physical capacity, capped at 96 MiB."""
    cap = 64 * 1024 * 1024  # conservative fallback = v7x physical VMEM per TensorCore
    try:
        info = pltpu.get_tpu_info()
        cap = int(getattr(info, "vmem_capacity_bytes", cap))
    except Exception:
        pass
    return int(min(cap * 3 // 4, 96 * 1024 * 1024))


VMEM_LIMIT = _vmem_limit_bytes()


def _pick_bk(kp, cap=2048):
    """Largest multiple of 128 that divides kp (kp is a multiple of 128) and is <= cap."""
    units = kp // 128
    max_units = max(1, cap // 128)
    best = 1
    for d in range(1, min(units, max_units) + 1):
        if units % d == 0:
            best = d
    return best * 128


def _pick_tm(m):
    return 256 if m >= 256 else _round_up(max(m, 8), 8)


# ----------------------------- Pallas kernels -------------------------------

def _make_matmul_kernel(has_res, relu, fuse_bn, emit_stats, eps, m_real):
    """K-tiled matmul accumulating directly into the resident f32 output block.

    Epilogue on the last K step:
      * fuse_bn:    batch-norm with batch stats over the (single) M block (+res, +relu)
      * emit_stats: write per-M-tile column sums / sums-of-squares (BN applied later)
      * else:       optional residual / relu only (row-local, safe under M tiling)
    """
    inv_m = 1.0 / float(m_real)

    def kernel(*refs):
        i = 0
        a_ref = refs[i]; i += 1
        b_ref = refs[i]; i += 1
        gamma_ref = beta_ref = res_ref = sum_ref = sq_ref = None
        if fuse_bn:
            gamma_ref = refs[i]; beta_ref = refs[i + 1]; i += 2
        if has_res:
            res_ref = refs[i]; i += 1
        o_ref = refs[i]; i += 1
        if emit_stats:
            sum_ref = refs[i]; sq_ref = refs[i + 1]; i += 2

        k = pl.program_id(1)
        nk = pl.num_programs(1)

        part = jnp.dot(a_ref[...], b_ref[...], preferred_element_type=jnp.float32)

        @pl.when(k == 0)
        def _():
            o_ref[...] = part

        @pl.when(k > 0)
        def _():
            o_ref[...] += part

        @pl.when(k == nk - 1)
        def _():
            acc = o_ref[...]
            if emit_stats:
                # Zero-padded rows contribute 0 to both sums -> stats stay exact.
                s = jnp.sum(acc, axis=0, keepdims=True)
                sq = jnp.sum(acc * acc, axis=0, keepdims=True)
                sum_ref[...] = jnp.broadcast_to(s[None, :, :], sum_ref.shape)
                sq_ref[...] = jnp.broadcast_to(sq[None, :, :], sq_ref.shape)
            else:
                if fuse_bn:
                    # Divide by the real row count so zero-padded rows do not bias the stats.
                    mean = jnp.sum(acc, axis=0, keepdims=True) * inv_m
                    var = jnp.sum(acc * acc, axis=0, keepdims=True) * inv_m - mean * mean
                    acc = (acc - mean) * jax.lax.rsqrt(var + eps) * gamma_ref[...] + beta_ref[...]
                if has_res:
                    acc = acc + res_ref[...]
                if relu:
                    acc = jnp.maximum(acc, 0.0)
                if fuse_bn or has_res or relu:
                    o_ref[...] = acc

    return kernel


def _make_bn_apply_kernel(has_res, relu):
    """Elementwise y*scale + shift (+residual) (+relu); M-tiled, 'parallel' grid."""

    def kernel(*refs):
        if has_res:
            y_ref, s_ref, t_ref, r_ref, o_ref = refs
        else:
            y_ref, s_ref, t_ref, o_ref = refs
        y = y_ref[...] * s_ref[...] + t_ref[...]
        if has_res:
            y = y + r_ref[...]
        if relu:
            y = jnp.maximum(y, 0.0)
        o_ref[...] = y

    return kernel


def _bn_apply(y, scale, shift, *, residual, relu, tm):
    mp, np_ = y.shape
    nm = mp // tm
    has_res = residual is not None
    operands = [y, scale.reshape(1, np_), shift.reshape(1, np_)]
    in_specs = [
        pl.BlockSpec((tm, np_), lambda mi: (mi, 0)),
        pl.BlockSpec((1, np_), lambda mi: (0, 0)),
        pl.BlockSpec((1, np_), lambda mi: (0, 0)),
    ]
    if has_res:
        operands.append(residual)
        in_specs.append(pl.BlockSpec((tm, np_), lambda mi: (mi, 0)))
    return pl.pallas_call(
        _make_bn_apply_kernel(has_res, relu),
        out_shape=jax.ShapeDtypeStruct((mp, np_), F32),
        grid=(nm,),
        in_specs=in_specs,
        out_specs=pl.BlockSpec((tm, np_), lambda mi: (mi, 0)),
        compiler_params=pltpu.CompilerParams(
            dimension_semantics=("parallel",),
            vmem_limit_bytes=VMEM_LIMIT,
        ),
    )(*operands)


def fused_matmul(a, b_pad, n_out, *, gamma=None, beta=None, residual=None,
                 relu=False, eps=BN_EPS):
    """out[:M, :n_out] of maybe_relu(maybe_bn(a @ b) + maybe_residual).

    a: (M, K) activation/im2col matrix (any float dtype, cast to bf16 here).
    b_pad: (Kp, Np) pre-padded bf16 weight with Kp = round_up(K, 128), Np = round_up(n_out, 128).
    BN uses training-mode batch statistics over the M rows (per output channel).
    """
    m, k_dim = a.shape
    kp, np_ = b_pad.shape
    assert kp == _round_up(k_dim, 128) and np_ % 128 == 0 and np_ >= n_out

    bk = _pick_bk(kp)
    nk = kp // bk
    tm = _pick_tm(m)
    mp = _round_up(m, tm)
    nm = mp // tm

    a_p = jnp.pad(a.astype(BF16), ((0, mp - m), (0, kp - k_dim)))

    has_bn = gamma is not None
    has_res = residual is not None
    fuse_bn = has_bn and nm == 1        # single M block -> per-block stats == batch stats
    emit_stats = has_bn and nm > 1      # M tiled -> two-stage BN
    res_in_matmul = has_res and not emit_stats

    operands = [a_p, b_pad]
    in_specs = [
        pl.BlockSpec((tm, bk), lambda mi, ki: (mi, ki)),
        pl.BlockSpec((bk, np_), lambda mi, ki: (ki, 0)),
    ]
    if fuse_bn:
        g = jnp.pad(gamma.astype(F32).reshape(1, -1), ((0, 0), (0, np_ - n_out)))
        bt = jnp.pad(beta.astype(F32).reshape(1, -1), ((0, 0), (0, np_ - n_out)))
        operands += [g, bt]
        in_specs += [pl.BlockSpec((1, np_), lambda mi, ki: (0, 0))] * 2
    res_pad = None
    if has_res:
        res_pad = jnp.pad(residual.astype(F32), ((0, mp - m), (0, np_ - n_out)))
    if res_in_matmul:
        operands.append(res_pad)
        in_specs.append(pl.BlockSpec((tm, np_), lambda mi, ki: (mi, 0)))

    out_shapes = [jax.ShapeDtypeStruct((mp, np_), F32)]
    out_specs = [pl.BlockSpec((tm, np_), lambda mi, ki: (mi, 0))]
    if emit_stats:
        # (nm, 8, Np) keeps the last-two block dims (8, Np) tile-aligned; row 0 holds the sums.
        out_shapes += [jax.ShapeDtypeStruct((nm, 8, np_), F32)] * 2
        out_specs += [pl.BlockSpec((1, 8, np_), lambda mi, ki: (mi, 0, 0))] * 2

    kernel = _make_matmul_kernel(
        has_res=res_in_matmul,
        relu=relu and not emit_stats,
        fuse_bn=fuse_bn,
        emit_stats=emit_stats,
        eps=eps,
        m_real=m,
    )
    results = pl.pallas_call(
        kernel,
        out_shape=tuple(out_shapes),
        grid=(nm, nk),
        in_specs=in_specs,
        out_specs=tuple(out_specs),
        compiler_params=pltpu.CompilerParams(
            dimension_semantics=("parallel", "arbitrary"),
            vmem_limit_bytes=VMEM_LIMIT,
        ),
    )(*operands)

    if emit_stats:
        y, psum, psq = results
        total = psum[:, 0, :].sum(axis=0)
        total_sq = psq[:, 0, :].sum(axis=0)
        mean = total / m
        var = total_sq / m - mean * mean
        scale = jnp.pad(gamma.astype(F32), (0, np_ - n_out)) * jax.lax.rsqrt(var + eps)
        shift = jnp.pad(beta.astype(F32), (0, np_ - n_out)) - mean * scale
        y = _bn_apply(y, scale, shift, residual=res_pad, relu=relu, tm=tm)
    else:
        y = results[0]

    return y[:m, :n_out]


def _max_reduce_kernel(x_ref, o_ref):
    o_ref[...] = jnp.max(x_ref[...], axis=0)


def window_max(windows):
    """windows: (KW, M, C) -> elementwise max over KW; M-tiled 'parallel' Pallas kernel."""
    kw, m, c = windows.shape
    tm = _pick_tm(m)
    mp = _round_up(m, tm)
    nm = mp // tm
    w = jnp.pad(windows, ((0, 0), (0, mp - m), (0, 0)))
    out = pl.pallas_call(
        _max_reduce_kernel,
        out_shape=jax.ShapeDtypeStruct((mp, c), windows.dtype),
        grid=(nm,),
        in_specs=[pl.BlockSpec((kw, tm, c), lambda mi: (0, mi, 0))],
        out_specs=pl.BlockSpec((tm, c), lambda mi: (mi, 0)),
        compiler_params=pltpu.CompilerParams(
            dimension_semantics=("parallel",),
            vmem_limit_bytes=VMEM_LIMIT,
        ),
    )(w)
    return out[:m]


# ------------------------------ glue (im2col etc.) --------------------------

def im2col_3d(x, ksize, stride, padding):
    """x: (N, D, H, W, C) -> (N*Do*Ho*Wo, kd*kh*kw*C), kernel-position-major ordering."""
    kd, kh, kw = ksize
    sd, sh, sw = stride
    pd, ph, pw = padding
    xp = jnp.pad(x, ((0, 0), (pd, pd), (ph, ph), (pw, pw), (0, 0)))
    n, d, h, w, c = xp.shape
    do = (d - kd) // sd + 1
    ho = (h - kh) // sh + 1
    wo = (w - kw) // sw + 1
    patches = []
    for a in range(kd):
        for b in range(kh):
            for cc in range(kw):
                patches.append(xp[:, a:a + do * sd:sd, b:b + ho * sh:sh, cc:cc + wo * sw:sw, :])
    col = jnp.stack(patches, axis=-2)               # (N,Do,Ho,Wo,P,C)
    col = col.reshape(n * do * ho * wo, kd * kh * kw * c)
    return col, (do, ho, wo)


def pool_windows_3d(x, ksize, stride, padding, pad_value):
    """x: (N, D, H, W, C) -> (kd*kh*kw, N*Do*Ho*Wo, C) stacked pooling windows."""
    kd, kh, kw = ksize
    sd, sh, sw = stride
    pd, ph, pw = padding
    xp = jnp.pad(x, ((0, 0), (pd, pd), (ph, ph), (pw, pw), (0, 0)),
                 constant_values=pad_value)
    n, d, h, w, c = xp.shape
    do = (d - kd) // sd + 1
    ho = (h - kh) // sh + 1
    wo = (w - kw) // sw + 1
    wins = []
    for a in range(kd):
        for b in range(kh):
            for cc in range(kw):
                wins.append(
                    xp[:, a:a + do * sd:sd, b:b + ho * sh:sh, cc:cc + wo * sw:sw, :]
                    .reshape(n * do * ho * wo, c))
    return jnp.stack(wins, axis=0), (do, ho, wo)


def gaussian_kl(mu, rho):
    sigma = jax.nn.softplus(rho)
    return jnp.sum(-jnp.log(sigma) + 0.5 * (sigma ** 2 + mu ** 2) - 0.5)


# ------------------------------ Bayesian layers ------------------------------

def bbb_conv3d(x, p, *, bn=None, relu=False, residual=None):
    """x: (N, D, H, W, Cin) NDHWC. Returns (out NDHWC, kl). conv+bn+residual+relu fused."""
    col, (do, ho, wo) = im2col_3d(x, p["ksize"], p["stride"], p["padding"])
    gamma = bn["gamma"] if bn is not None else None
    beta = bn["beta"] if bn is not None else None
    cout = p["cout"]
    res2d = residual.reshape(-1, cout) if residual is not None else None
    out2d = fused_matmul(col, p["w_pad"], cout, gamma=gamma, beta=beta,
                         residual=res2d, relu=relu)
    out = out2d.reshape(x.shape[0], do, ho, wo, cout)
    return out, gaussian_kl(p["mu"], p["rho"])


def bbb_linear(x, p):
    out = fused_matmul(x.astype(F32), p["w_pad"], p["cout"])
    # TODO(synk): BBBLinearFactorial bias term omitted (layer definition not provided).
    return out, gaussian_kl(p["mu"], p["rho"])


# ------------------------------ parameter init -------------------------------

def init_conv(key, cin, cout, k, stride, padding):
    k = _triple(k)
    fan_out = cout * k[0] * k[1] * k[2]
    std = math.sqrt(2.0 / fan_out)      # kaiming_normal_(mode='fan_out')
    mu_t = std * jax.random.normal(key, (cout, cin) + k, dtype=F32)   # PyTorch layout
    kdim = k[0] * k[1] * k[2] * cin
    # Pre-layout once: (kd,kh,kw,Cin,Cout) flattened, matching im2col ordering.
    mu = jnp.transpose(mu_t, (2, 3, 4, 1, 0)).reshape(kdim, cout)
    rho = jnp.full((kdim, cout), -5.0, dtype=F32)
    kp = _round_up(kdim, 128)
    np_ = _round_up(cout, 128)
    w_pad = jnp.pad(mu, ((0, kp - kdim), (0, np_ - cout))).astype(BF16)
    return dict(mu=mu, rho=rho, w_pad=w_pad, cout=cout, ksize=k,
                stride=_triple(stride), padding=_triple(padding))


def init_bn(c):
    return dict(gamma=jnp.ones((c,), F32), beta=jnp.zeros((c,), F32))


def init_linear(key, cin, cout):
    std = 1.0 / math.sqrt(cin)
    mu = std * jax.random.normal(key, (cout, cin), dtype=F32)
    rho = jnp.full((cout, cin), -5.0, dtype=F32)
    kp = _round_up(cin, 128)
    np_ = _round_up(cout, 128)
    w_pad = jnp.pad(mu.T, ((0, kp - cin), (0, np_ - cout))).astype(BF16)
    return dict(mu=mu, rho=rho, w_pad=w_pad, cout=cout)


def init_basic_block(key, inplanes, planes, stride):
    k1, k2, k3 = jax.random.split(key, 3)
    params = dict(
        conv1=init_conv(k1, inplanes, planes, 3, stride, 1),
        bn1=init_bn(planes),
        conv2=init_conv(k2, planes, planes, 3, 1, 1),
        bn2=init_bn(planes),
        downsample=None,
    )
    if stride != 1 or inplanes != planes * BLOCK_EXPANSION:
        # shortcut_type='B': 1x1x1 BBBConv3d(stride) + BatchNorm3d
        params["downsample"] = dict(
            conv=init_conv(k3, inplanes, planes * BLOCK_EXPANSION, 1, stride, 0),
            bn=init_bn(planes * BLOCK_EXPANSION),
        )
    return params


def init_bbb_resnet(key, layers, num_classes):
    keys = jax.random.split(key, 6)
    params = dict(conv1=init_conv(keys[0], 3, 64, 7, (1, 2, 2), (3, 3, 3)),
                  bn1=init_bn(64))
    inplanes = 64
    plane_list = [64, 128, 256, 512]
    stride_list = [1, 2, 2, 2]
    for li, (planes, stride, nblocks) in enumerate(zip(plane_list, stride_list, layers)):
        blocks = []
        bkeys = jax.random.split(keys[1 + li], nblocks)
        for bi in range(nblocks):
            s = stride if bi == 0 else 1
            blocks.append(init_basic_block(bkeys[bi], inplanes, planes, s))
            inplanes = planes * BLOCK_EXPANSION
        params[f"layer{li + 1}"] = blocks
    params["fc"] = init_linear(keys[5], 512 * BLOCK_EXPANSION, num_classes)
    return params


# ------------------------------ model forward --------------------------------

def basic_block_forward(x, p):
    kl = 0.0
    out, _kl = bbb_conv3d(x, p["conv1"], bn=p["bn1"], relu=True)
    kl += _kl
    if p["downsample"] is not None:
        residual, _kl = bbb_conv3d(x, p["downsample"]["conv"],
                                   bn=p["downsample"]["bn"], relu=False)
        kl += _kl
    else:
        residual = x
    # out = relu(bn2(conv2(out)) + residual), fused in the Pallas epilogue (or BN-apply kernel)
    out, _kl = bbb_conv3d(out, p["conv2"], bn=p["bn2"], relu=True, residual=residual)
    kl += _kl
    return out, kl


def bbb_resnet_forward(params, x_ncdhw):
    x = jnp.transpose(x_ncdhw, (0, 2, 3, 4, 1)).astype(F32)   # NCDHW -> NDHWC
    kl = 0.0
    # stem: conv1 + bn1 + ReLU (BN stats via in-kernel partial sums when M is tiled)
    x, _kl = bbb_conv3d(x, params["conv1"], bn=params["bn1"], relu=True)
    kl += _kl
    # MaxPool3d(3, stride=2, padding=1): window gather (glue) + M-tiled Pallas max reduction
    wins, (do, ho, wo) = pool_windows_3d(x, (3, 3, 3), (2, 2, 2), (1, 1, 1), -jnp.inf)
    x = window_max(wins).reshape(x.shape[0], do, ho, wo, x.shape[-1])
    for li in range(1, 5):
        for bp in params[f"layer{li}"]:
            x, _kl = basic_block_forward(x, bp)
            kl += _kl
    # AvgPool3d((last_duration, last_size, last_size)): with this config the window equals
    # the remaining (1,1,1) spatial extent, so a global spatial mean is exact.
    x = jnp.mean(x, axis=(1, 2, 3))                            # (N, 512)
    out, _kl = bbb_linear(x, params["fc"])
    kl += _kl
    return out, kl


if __name__ == "__main__":
    key = jax.random.PRNGKey(0)
    pkey, xkey = jax.random.split(key)
    # BBBResNet(block=BasicBlock, layers=[1,1,1,1], sample_size=16, sample_duration=8,
    #           shortcut_type='B', num_classes=16)
    params = init_bbb_resnet(pkey, layers=[1, 1, 1, 1], num_classes=16)
    x = jax.random.normal(xkey, (2, 3, 8, 16, 16), dtype=F32)  # NCDHW: (batch, 3, D, H, W)
    logits, kl = bbb_resnet_forward(params, x)
    jax.block_until_ready((logits, kl))
    assert logits.shape == (2, 16) and kl.shape == ()
    assert bool(jnp.all(jnp.isfinite(logits))) and bool(jnp.isfinite(kl))
    print("KERNEL_OK")
</pallas_src>

<mosaic_0001>
module attributes {stable_mosaic.version = 11 : i64} {
  func.func @kernel(%arg0: i32, %arg1: i32, %arg2: memref<256x1152xbf16, #tpu.memory_space<vmem>>, %arg3: memref<1152x128xbf16, #tpu.memory_space<vmem>>, %arg4: memref<256x128xf32, #tpu.memory_space<vmem>>, %arg5: memref<1x8x128xf32, #tpu.memory_space<vmem>>, %arg6: memref<1x8x128xf32, #tpu.memory_space<vmem>>) attributes {dimension_semantics = [#tpu.dimension_semantics<parallel>, #tpu.dimension_semantics<arbitrary>], iteration_bounds = array<i64: 4, 1>, scalar_prefetch = 0 : i64, scratch_operands = 0 : i64, tpu.core_type = #tpu.core_type<tc>, window_params = [{transform_indices = @transform_0, window_bounds = array<i64: 256, 1152>}, {transform_indices = @transform_1, window_bounds = array<i64: 1152, 128>}, {transform_indices = @transform_2, window_bounds = array<i64: 256, 128>}, {transform_indices = @transform_3, window_bounds = array<i64: 1, 8, 128>}, {transform_indices = @transform_4, window_bounds = array<i64: 1, 8, 128>}]} {
    %c0 = arith.constant 0 : index
    %c0_0 = arith.constant 0 : index
    %0 = vector.load %arg2[%c0, %c0_0] : memref<256x1152xbf16, #tpu.memory_space<vmem>>, vector<256x1152xbf16>
    %c0_1 = arith.constant 0 : index
    %c0_2 = arith.constant 0 : index
    %1 = vector.load %arg3[%c0_1, %c0_2] : memref<1152x128xbf16, #tpu.memory_space<vmem>>, vector<1152x128xbf16>
    %cst = arith.constant dense<0.000000e+00> : vector<256x128xf32>
    %2 = tpu.matmul %0, %1, %cst {dimension_numbers = #tpu.dot_dimension_numbers<[1], [0], [0], [1], [0, 0, 1, 1], [], []>} : vector<256x1152xbf16>, vector<1152x128xbf16>, vector<256x128xf32> -> vector<256x128xf32>
    %c0_i32 = arith.constant 0 : i32
    %3 = arith.cmpi eq, %arg1, %c0_i32 : i32
    %4 = arith.extui %3 : i1 to i32
    %c0_i32_3 = arith.constant 0 : i32
    %5 = arith.cmpi ne, %4, %c0_i32_3 : i32
    scf.if %5 {
      %c0_8 = arith.constant 0 : index
      %c0_9 = arith.constant 0 : index
      %12 = vector.load %arg4[%c0_8, %c0_9] : memref<256x128xf32, #tpu.memory_space<vmem>>, vector<256x128xf32>
      tpu.vector_store %arg4[%c0_8, %c0_9], %2 {strides = array<i32>} : memref<256x128xf32, #tpu.memory_space<vmem>>, vector<256x128xf32>,
    } else {
    }
    %c0_i32_4 = arith.constant 0 : i32
    %6 = arith.cmpi sgt, %arg1, %c0_i32_4 : i32
    %7 = arith.extui %6 : i1 to i32
    %c0_i32_5 = arith.constant 0 : i32
    %8 = arith.cmpi ne, %7, %c0_i32_5 : i32
    scf.if %8 {
      %c0_8 = arith.constant 0 : index
      %c0_9 = arith.constant 0 : index
      %12 = vector.load %arg4[%c0_8, %c0_9] : memref<256x128xf32, #tpu.memory_space<vmem>>, vector<256x128xf32>
      %13 = arith.addf %12, %2 : vector<256x128xf32>
      %c0_10 = arith.constant 0 : index
      %c0_11 = arith.constant 0 : index
      %14 = vector.load %arg4[%c0_10, %c0_11] : memref<256x128xf32, #tpu.memory_space<vmem>>, vector<256x128xf32>
      tpu.vector_store %arg4[%c0_10, %c0_11], %13 {strides = array<i32>} : memref<256x128xf32, #tpu.memory_space<vmem>>, vector<256x128xf32>,
    } else {
    }
    %c0_i32_6 = arith.constant 0 : i32
    %9 = arith.cmpi eq, %arg1, %c0_i32_6 : i32
    %10 = arith.extui %9 : i1 to i32
    %c0_i32_7 = arith.constant 0 : i32
    %11 = arith.cmpi ne, %10, %c0_i32_7 : i32
    scf.if %11 {
      %c0_8 = arith.constant 0 : index
      %c0_9 = arith.constant 0 : index
      %12 = vector.load %arg4[%c0_8, %c0_9] : memref<256x128xf32, #tpu.memory_space<vmem>>, vector<256x128xf32>
      %cst_10 = arith.constant dense<0.000000e+00> : vector<128xf32>
      %13 = vector.multi_reduction <add>, %12, %cst_10 [0] : vector<256x128xf32> to vector<128xf32>
      %14 = vector.shape_cast %13 : vector<128xf32> to vector<1x128xf32>
      %15 = arith.mulf %12, %12 : vector<256x128xf32>
      %cst_11 = arith.constant dense<0.000000e+00> : vector<128xf32>
      %16 = vector.multi_reduction <add>, %15, %cst_11 [0] : vector<256x128xf32> to vector<128xf32>
      %17 = vector.shape_cast %16 : vector<128xf32> to vector<1x128xf32>
      %18 = vector.shape_cast %14 : vector<1x128xf32> to vector<1x1x128xf32>
      %19 = vector.shape_cast %18 : vector<1x1x128xf32> to vector<1x1x128xf32>
      %20 = vector.broadcast %19 : vector<1x1x128xf32> to vector<1x8x128xf32>
      %c0_12 = arith.constant 0 : index
      %c0_13 = arith.constant 0 : index
      %c0_14 = arith.constant 0 : index
      %21 = vector.load %arg5[%c0_12, %c0_13, %c0_14] : memref<1x8x128xf32, #tpu.memory_space<vmem>>, vector<1x8x128xf32>
      tpu.vector_store %arg5[%c0_12, %c0_13, %c0_14], %20 {strides = array<i32>} : memref<1x8x128xf32, #tpu.memory_space<vmem>>, vector<1x8x128xf32>,
      %22 = vector.shape_cast %17 : vector<1x128xf32> to vector<1x1x128xf32>
      %23 = vector.shape_cast %22 : vector<1x1x128xf32> to vector<1x1x128xf32>
      %24 = vector.broadcast %23 : vector<1x1x128xf32> to vector<1x8x128xf32>
      %c0_15 = arith.constant 0 : index
      %c0_16 = arith.constant 0 : index
      %c0_17 = arith.constant 0 : index
      %25 = vector.load %arg6[%c0_15, %c0_16, %c0_17] : memref<1x8x128xf32, #tpu.memory_space<vmem>>, vector<1x8x128xf32>
      tpu.vector_store %arg6[%c0_15, %c0_16, %c0_17], %24 {strides = array<i32>} : memref<1x8x128xf32, #tpu.memory_space<vmem>>, vector<1x8x128xf32>,
    } else {
    }
    return
  }
  func.func @transform_0(%arg0: i32, %arg1: i32) -> (i32, i32) {
    %c0_i32 = arith.constant 0 : i32
    return %arg0, %arg1 : i32, i32
  }
  func.func @transform_1(%arg0: i32, %arg1: i32) -> (i32, i32) {
    %c0_i32 = arith.constant 0 : i32
    %c0_i32_0 = arith.constant 0 : i32
    return %arg1, %c0_i32 : i32, i32
  }
  func.func @transform_2(%arg0: i32, %arg1: i32) -> (i32, i32) {
    %c0_i32 = arith.constant 0 : i32
    %c0_i32_0 = arith.constant 0 : i32
    return %arg0, %c0_i32 : i32, i32
  }
  func.func @transform_3(%arg0: i32, %arg1: i32) -> (i32, i32, i32) {
    %c0_i32 = arith.constant 0 : i32
    %c0_i32_0 = arith.constant 0 : i32
    %c0_i32_1 = arith.constant 0 : i32
    return %arg0, %c0_i32, %c0_i32_0 : i32, i32, i32
  }
  func.func @transform_4(%arg0: i32, %arg1: i32) -> (i32, i32, i32) {
    %c0_i32 = arith.constant 0 : i32
    %c0_i32_0 = arith.constant 0 : i32
    %c0_i32_1 = arith.constant 0 : i32
    return %arg0, %c0_i32, %c0_i32_0 : i32, i32, i32
  }
}

</mosaic_0001>

<bundles_post_ra>
// kernel: tpu_custom_call.1
= control target key start
LH: loop header
LB: loop body
LE: loop exit
PB: predicated region body
PF: predicated region fallthrough
CT: control target
= control target key end

     0   :  { %10 = vsyncpa [#allocation3], 0  ;;  %s5261_s0 = inlined_call_operand.hbm [shape: bf16[1024,1152], index: 0, kind: input, shape index: {}]   ;;  %s5262_s1 = inlined_call_operand.hbm [shape: bf16[1152,128], index: 1, kind: input, shape index: {}]   ;;  %s5263_s2 = inlined_call_operand.hbm [shape: f32[1024,128], index: 2, kind: output, shape index: {0}]   ;;  %s5264_s3 = inlined_call_operand.hbm [shape: f32[4,8,128], index: 3, kind: output, shape index: {1}]   ;;  %s5265_s4 = inlined_call_operand.hbm [shape: f32[4,8,128], index: 4, kind: output, shape index: {2}]  }
   0x1   :  { %12 = vsyncpa [#allocation3 + $0x1], 0 }
   0x2   :  { %13 = vsyncpa [#allocation6], 0 }
   0x3   :  { %14 = vsyncpa [#allocation4], 0 }
   0x4   :  { %16 = vsyncpa [#allocation4 + $0x1], 0 }
   0x5   :  { %17 = vsyncpa [#allocation9], 0 }
   0x6   :  { %19 = vsyncpa [#allocation9 + $0x1], 0  ;;  %s4421_s15 = smov 0   ;;  %s4423_s16 = smov 0  }
   0x7   :  { %s4425_s17 = smov 0   ;;  %s4427_s18 = smov 0  }
   0x8   :  { %s4429_s19 = smov 0   ;;  %s4431_s20 = smov 0  }
   0x9 LB: > { %s4452_s21 = sadd.s32 4294967295, %s4383_s20   ;;  %s3043_s22 = sadd.s32 4294967294, %s4383_s20   ;;  %s4383_s20 = sphi %s4431_s20, %s25_s20   ;;  %s4379_s19 = sphi %s4429_s19, %s5299_s19   ;;  %s4375_s18 = sphi %s4427_s18, %s5298_s18   ;;  %s4371_s17 = sphi %s4425_s17, %s5297_s17   ;;  %s4367_s16 = sphi %s4423_s16, %s5296_s16   ;;  %s4363_s15 = sphi %s4421_s15, %s5295_s15  }
   0xa   : > { %p59_p0 = scmp.ne.s32.totalorder %s4367_s16, %s4363_s15  ;;  %p60_p1 = scmp.eq.s32.totalorder %s4452_s21, 0 }
   0xb   : > { %p115_p3 = scmp.eq.s32.totalorder %s3043_s22, 3  ;;  %p3044_p5 = scmp.ge.s32.totalorder %s4383_s20, 1 }
   0xc   : > { %p4463_p4 = por %p60_p1, %p59_p0  ;;  %p174_p7 = scmp.lt.s32.totalorder %s4383_s20, 5 }
   0xd   : > { %p4468_p6 = por %p115_p3, %p59_p0  ;;  %s4385_s26 = smov [#allocation5]  }
   0xe   : > { %p4473_p8 = pnand %p3044_p5, %p174_p7  ;;  %s189_s27 = sshll.u32 %s4385_s26, 4  ;;  %s190_s27 = int_to_ptr.vmem [resolvable:$true] %s189_s27 }
   0xf   : > { %s37_s29 = sadd.s32 1, %s4379_s19  ;;  %s4200_s30 = scalar_lea.vmem %s190_s27, 9216 }
  0x10   : > { %p3832_p9 = pneg %p4473_p8  ;;  %p4201_p12 = scmp.ne.s32.totalorder %s190_s27, %s4200_s30 }
  0x11   : > { %p4208_p3 = scmp.lt.s32.totalorder %s190_s27, %s190_s27  ;;  %p4209_p5 = scmp.lt.s32.totalorder %s4200_s30, %s4200_s30 }
  0x12   : > { %p4481_p10 = pnand %p3832_p9, %p60_p1 }
  0x13   : > { %p4210_p7 = por %p4209_p5, %p4208_p3 }
  0x14   : > { %p4191_p11 = pneg %p4481_p10 }
  0x16   : > { %p4203_p13 = pnand %p4201_p12, %p4191_p11 }
  0x18   : > { %p4204_p0 = pneg %p4203_p13 }
  0x1a   : > { %p4211_p2 = pnand %p4210_p7, %p4204_p0 }
  0x1c   : > { %4214 = shalt.err (!%p4211_p2)
}
  0x1d   : > { %s4386_s5 = smov 64   ;;  %s4387_s6 = smov 4  }
  0x1e   : > { %3835 = dma.hbm_to_vmem [thread:$0]  (!%p4481_p10), %s5262_s1, 9216, %s190_s27, [#allocation6], %s4386_s5, %s4386_s5, %s4387_s6  }
  0x1f   : > { %p39_p9 = scmp.ge.s32.totalorder %s37_s29, 4  ;;  %s46_s9 = sadd.s32 1, %s4371_s17 }
  0x20   : > { %p53_p2 = scmp.ne.s32.totalorder %s4371_s17, %s4367_s16  ;;  %p54_p11 = scmp.eq.s32.totalorder %s4383_s20, 0 }
  0x21   : > { %s5301_s29 = smov (%p39_p9, %s37_s29), 0  ;;  %p5270_p13 = scmp.eq.s32.totalorder %s4452_s21, 3 }
  0x22   : > { %p55_p12 = por %p54_p11, %p53_p2  ;;  %s41_s11 = ssub.s32 %s4379_s19, %s5301_s29 }
  0x23   : > { %p4501_p0 = por %p5270_p13, %p53_p2  ;;  %p3851_p3 = scmp.lt.s32.totalorder %s4383_s20, 4 }
  0x24   : > { %p44_p5 = scmp.eq.s32.totalorder %s41_s11, 0  ;;  %s203_s12 = sand.u32 1, %s4371_s17  }
  0x25   : > { %s3817_s13 = smul.u32 1152, %s203_s12  ;;  %p4513_p10 = pnand %p3851_p3, %p55_p12 }
  0x26   : > { %s4510_s14 = scalar_select %p44_p5, %s4371_s17, %s46_s9  }
  0x27   : > { %s3818_s26 = smul.u32 18432, %s4379_s19  ;;  %s207_s27 = scalar_lea.vmem [#allocation2], %s3817_s13 }
  0x28   : > { %s217_s28 = sshll.u32 %s207_s27, 4  ;;  %s204_s8 = scalar_lea.sflag [#allocation3], %s203_s12  ;;  %s218_s28 = int_to_ptr.vmem [resolvable:$true] %s217_s28 }
  0x29   : > { %s216_s7 = scalar_lea.hbm %s5261_s0, %s3818_s26  ;;  %p4217_p7 = pneg %p4513_p10 }
  0x2a   : > { %s4228_s11 = scalar_lea.vmem %s218_s28, 18432  ;;  %s4388_s9 = smov [#allocation2]  }
  0x2b   : > { %p4229_p9 = scmp.ne.s32.totalorder %s218_s28, %s4228_s11  ;;  %s4233_s13 = sshll.u32 %s4388_s9, 4  ;;  %s4234_s13 = int_to_ptr.vmem [resolvable:$false] %s4233_s13 }
  0x2c   : > { %s4235_s27 = scalar_lea.vmem %s4234_s13, 36864  ;;  %p4236_p12 = scmp.lt.s32.totalorder %s218_s28, %s4234_s13 }
  0x2d   : > { %p4231_p2 = pnand %p4229_p9, %p4217_p7  ;;  %p4237_p13 = scmp.lt.s32.totalorder %s4235_s27, %s4228_s11 }
  0x2f   : > { %p4232_p11 = pneg %p4231_p2  ;;  %p4238_p3 = por %p4237_p13, %p4236_p12 }
  0x31   : > { %p4239_p5 = pnand %p4238_p3, %p4232_p11 }
  0x33   : > { %4242 = shalt.err (!%p4239_p5)
}
  0x34   : > { %s4389_s5 = smov 576   ;;  %s4390_s26 = smov 36  }
  0x35   : > { %3839 = dma.hbm_to_vmem [thread:$0]  (!%p4513_p10), %s216_s7, 18432, %s218_s28, %s204_s8, %s4389_s5, %s4389_s5, %s4390_s26  }
  0x36   : > { %229 = sbr.rel (%p4473_p8) target bundleno = 645 (0x285), region = 28 }
  0x3b   : > { %s4527_s12 = sand.u32 1, %s4367_s16  }
  0x3c   : > { %s3819_s6 = smul.u32 1152, %s4527_s12  ;;  %s232_s9 = scalar_lea.sflag [#allocation3], %s4527_s12 }
  0x3e   : > { %s4531_s11 = scalar_lea.vmem [#allocation2], %s3819_s6 }
  0x3f   : > { %4346 = dma.done.wait (%p4463_p4), %s232_s9, 18432  }
  0x40   : > { %4348 = vsyncadd (%p4463_p4), %s232_s9, 4294948864 }
  0x41   : > { %4350 = dma.done.wait (%p60_p1), [#allocation6], 9216  }
  0x42   : > { %4352 = vsyncadd (%p60_p1), [#allocation6], 4294958080  ;;  %v3909_v0 = vld [vmem:[#allocation5 + $0x78] sm:$0xff]   ;;  %v3911_v2 = vld [vmem:[#allocation5 + $0x70] sm:$0xff]   ;;  %s3052_s23 = sshll.u32 %s4527_s12, 8  ;;  %s3280_s28 = sshll.u32 %s4375_s18, 12 }
  0x43   : > { %v3910_v1 = vld [vmem:[#allocation5 + $0x38] sm:$0xff]   ;;  %3281 = vmatprep.subr.bf16.mxu0 %v3909_v0  ;;  %3801 = vmatprep.subr.bf16.mxu1 %v3909_v0  ;;  %v3912_v3 = vld [vmem:[#allocation5 + $0x30] sm:$0xff]   ;;  %v3913_v4 = vld [vmem:[#allocation5 + $0x68] sm:$0xff]   ;;  %s5022_s25 = scalar_lea.vmem [#allocation7], %s3052_s23  ;;  %s5144_s13 = scalar_lea.hbm %s5263_s2, %s3280_s28 }
  0x44   : > { %3282 = vmatpush3.bf16.msra.mxu0 %v3910_v1  ;;  %3809 = vmatpush3.bf16.msra.mxu1 %v3910_v1  ;;  %v3914_v5 = vld [vmem:[#allocation5 + $0x28] sm:$0xff]   ;;  %v3915_v6 = vld [vmem:[#allocation5 + $0x60] sm:$0xff]   ;;  %v3917_v8 = vld [vmem:[#allocation5 + $0x58] sm:$0xff]   ;;  %s2859_s30 = sshll.u32 %s5022_s25, 4  ;;  %s2836_s27 = scalar_lea.sflag [#allocation4], %s4527_s12  ;;  %s5146_s30 = int_to_ptr.vmem [resolvable:$true] %s2859_s30 }
  0x45   : > { %3283 = vmatprep.subr.bf16.mxu0 %v3911_v2  ;;  %3802 = vmatprep.subr.bf16.mxu1 %v3911_v2  ;;  %v3916_v7 = vld [vmem:[#allocation5 + $0x20] sm:$0xff]   ;;  %v3918_v9 = vld [vmem:[#allocation5 + $0x18] sm:$0xff]   ;;  %v3919_v10 = vld [vmem:[#allocation5 + $0x50] sm:$0xff]   ;;  %s4243_s5 = scalar_lea.vmem %s5146_s30, 4096  ;;  %s4391_s26 = smov [#allocation7]  }
  0x46   : > { %v3927_v11 = vld [vmem:[%s4531_s11 + $0x4] ss:$36 sps:$4 sm:$0xff]   ;;  %v3920_v13 = vld [vmem:[#allocation5 + $0x10] sm:$0xff]   ;;  %v3931_v18 = vld [vmem:[#allocation5 + $0xf8] sm:$0xff]   ;;  %p4244_p1 = scmp.ne.s32.totalorder %s5146_s30, %s4243_s5  ;;  %s4247_s6 = sshll.u32 %s4391_s26, 4  ;;  %s4248_s6 = int_to_ptr.vmem [resolvable:$false] %s4247_s6 }
  0x47   : > { %v3930_v12 = vld [vmem:[%s4531_s11 + $0x364] ss:$36 sps:$4 sm:$0xff]   ;;  %1783 = vmatprep.mubr.bf16.mxu0 %v3927_v11  ;;  %v3932_v21 = vld [vmem:[#allocation5 + $0x178] sm:$0xff]   ;;  %v3935_v24 = vld [vmem:[#allocation5 + $0xf0] sm:$0xff]   ;;  %s4249_s9 = scalar_lea.vmem %s4248_s6, 8192  ;;  %p4250_p10 = scmp.lt.s32.totalorder %s5146_s30, %s4248_s6 }
  0x48   : > { %3284 = vmatpush3.bf16.msra.mxu0 %v3912_v3  ;;  %3810 = vmatpush3.bf16.msra.mxu1 %v3912_v3  ;;  %v3921_v14 = vld [vmem:[#allocation5 + $0x48] sm:$0xff]   ;;  %v3923_v16 = vld [vmem:[#allocation5 + $0x40] sm:$0xff]   ;;  %v3933_v22 = vld [vmem:[#allocation5 + $0xb8] sm:$0xff]   ;;  %p4245_p4 = pnand %p4244_p1, %p4501_p0  ;;  %p4251_p7 = scmp.lt.s32.totalorder %s4249_s9, %s4243_s5 }
  0x49   : > { %3285 = vmatprep.subr.bf16.mxu0 %v3913_v4  ;;  %3803 = vmatprep.subr.bf16.mxu1 %v3913_v4  ;;  %v3922_v15 = vld [vmem:[#allocation5 + $0x8] sm:$0xff]   ;;  %v3924_v17 = vld [vmem:[#allocation5] sm:$0xff]   ;;  %v3934_v23 = vld [vmem:[#allocation5 + $0x138] sm:$0xff]  }
  0x4a   : > { %1879 = vmatprep.mubr.bf16.mxu1 %v3930_v12  ;;  %v3925_v19 = vld [vmem:[%s4531_s11] ss:$36 sps:$4 sm:$0xff]   ;;  %v3937_v25 = vld [vmem:[%s4531_s11 + $0x4c] ss:$36 sps:$4 sm:$0xff]   ;;  %v3949_v35 = vld [vmem:[%s4531_s11 + $0x94] ss:$36 sps:$4 sm:$0xff]   ;;  %p4246_p8 = pneg %p4245_p4  ;;  %p4252_p9 = por %p4251_p7, %p4250_p10 }
  0x4b   : > { %v3928_v20 = vld [vmem:[%s4531_s11 + $0x360] ss:$36 sps:$4 sm:$0xff]   ;;  %v3939_v26 = vld [vmem:[%s4531_s11 + $0x3ac] ss:$36 sps:$4 sm:$0xff]   ;;  %v3951_v36 = vld [vmem:[%s4531_s11 + $0x3f4] ss:$36 sps:$4 sm:$0xff]  }
  0x4c   : > { %3286 = vmatpush3.bf16.msra.mxu0 %v3914_v5  ;;  %3811 = vmatpush3.bf16.msra.mxu1 %v3914_v5  ;;  %v3946_v27 = vld [vmem:[#allocation5 + $0x170] sm:$0xff]   ;;  %v3941_v30 = vld [vmem:[%s4531_s11 + $0x48] ss:$36 sps:$4 sm:$0xff]   ;;  %v3945_v34 = vld [vmem:[#allocation5 + $0xe0] sm:$0xff]   ;;  %p4253_p2 = pnand %p4252_p9, %p4246_p8 }
  0x4d   : > { %3287 = vmatprep.subr.bf16.mxu0 %v3915_v6  ;;  %3804 = vmatprep.subr.bf16.mxu1 %v3915_v6  ;;  %v3936_v28 = vld [vmem:[#allocation5 + $0xb0] sm:$0xff]   ;;  %v3942_v31 = vld [vmem:[%s4531_s11 + $0x3a8] ss:$36 sps:$4 sm:$0xff]   ;;  %v3947_v37 = vld [vmem:[#allocation5 + $0xa0] sm:$0xff]  }
  0x4e   : > { %v3948_v29 = vld [vmem:[#allocation5 + $0x130] sm:$0xff]   ;;  %v3943_v32 = vld [vmem:[#allocation5 + $0xe8] sm:$0xff]   ;;  %v3955_v38 = vld [vmem:[#allocation5 + $0xd8] sm:$0xff]  }
  0x4f   : > { %v3944_v33 = vld [vmem:[#allocation5 + $0xa8] sm:$0xff]   ;;  %v3953_v39 = vld [vmem:[%s4531_s11 + $0x90] ss:$36 sps:$4 sm:$0xff]   ;;  %v3956_v42 = vld [vmem:[#allocation5 + $0x98] sm:$0xff]  }
  0x50   : > { %3288 = vmatpush3.bf16.msra.mxu0 %v3916_v7  ;;  %3812 = vmatpush3.bf16.msra.mxu1 %v3916_v7  ;;  %v3954_v40 = vld [vmem:[%s4531_s11 + $0x3f0] ss:$36 sps:$4 sm:$0xff]   ;;  %v3966_v41 = vld [vmem:[#allocation5 + $0x168] sm:$0xff]   ;;  %v3959_v45 = vld [vmem:[%s4531_s11 + $0xdc] ss:$36 sps:$4 sm:$0xff]  }
  0x51   : > { %3289 = vmatprep.subr.bf16.mxu0 %v3917_v8  ;;  %3805 = vmatprep.subr.bf16.mxu1 %v3917_v8  ;;  %v3957_v43 = vld [vmem:[#allocation5 + $0xd0] sm:$0xff]   ;;  %v3968_v44 = vld [vmem:[#allocation5 + $0x128] sm:$0xff]   ;;  %v3961_v46 = vld [vmem:[%s4531_s11 + $0x43c] ss:$36 sps:$4 sm:$0xff]  }
  0x52   : > { %v3958_v47 = vld [vmem:[#allocation5 + $0x90] sm:$0xff]   ;;  %v3963_v48 = vld [vmem:[%s4531_s11 + $0xd8] ss:$36 sps:$4 sm:$0xff]   ;;  %v3965_v50 = vld [vmem:[#allocation5 + $0xc8] sm:$0xff]  }
  0x53   : > { %v3964_v49 = vld [vmem:[%s4531_s11 + $0x438] ss:$36 sps:$4 sm:$0xff]   ;;  %v3967_v51 = vld [vmem:[#allocation5 + $0x88] sm:$0xff]   ;;  %v3969_v53 = vld [vmem:[#allocation5 + $0xc0] sm:$0xff]  }
  0x54   : > { %3290 = vmatpush3.bf16.msra.mxu0 %v3918_v9  ;;  %3813 = vmatpush3.bf16.msra.mxu1 %v3918_v9  ;;  %v3971_v52 = vld [vmem:[%s4531_s11 + $0x124] ss:$36 sps:$4 sm:$0xff]   ;;  %v3975_v56 = vld [vmem:[%s4531_s11 + $0xc] ss:$36 sps:$4 sm:$0xff]   ;;  %v3977_v60 = vld [vmem:[#allocation5 + $0x1f8] sm:$0xff]  }
  0x55   : > { %3291 = vmatprep.subr.bf16.mxu0 %v3919_v10  ;;  %3806 = vmatprep.subr.bf16.mxu1 %v3919_v10  ;;  %v3979_v54 = vld [vmem:[#allocation5 + $0x160] sm:$0xff]   ;;  %v3973_v58 = vld [vmem:[%s4531_s11 + $0x8] ss:$36 sps:$4 sm:$0xff]   ;;  %v3978_v61 = vld [vmem:[#allocation5 + $0x1b8] sm:$0xff]  }
  0x56   : > { %v3980_v55 = vld [vmem:[#allocation5 + $0x120] sm:$0xff]   ;;  %v3981_v62 = vld [vmem:[%s4531_s11 + $0x16c] ss:$36 sps:$4 sm:$0xff]   ;;  %v3993_v63 = vld [vmem:[#allocation5 + $0x158] sm:$0xff]  }
  0x57   : > { %v3970_v57 = vld [vmem:[#allocation5 + $0x80] sm:$0xff]   ;;  %v3983_v0 = vld [vmem:[%s4531_s11 + $0x54] ss:$36 sps:$4 sm:$0xff]   ;;  %v3985_v4 = vld [vmem:[%s4531_s11 + $0x168] ss:$36 sps:$4 sm:$0xff]  }
  0x58   : > { %3292 = vmatpush3.bf16.msra.mxu0 %v3920_v13  ;;  %3814 = vmatpush3.bf16.msra.mxu1 %v3920_v13  ;;  %v3976_v59 = vld [vmem:[%s4531_s11 + $0x120] ss:$36 sps:$4 sm:$0xff]   ;;  %v3995_v1 = vld [vmem:[#allocation5 + $0x118] sm:$0xff]   ;;  %v3994_v2 = vld [vmem:[#allocation5 + $0x1f0] sm:$0xff]  }
  0x59   : > { %3293 = vmatprep.subr.bf16.mxu0 %v3921_v14  ;;  %3807 = vmatprep.subr.bf16.mxu1 %v3921_v14  ;;  %v3996_v3 = vld [vmem:[#allocation5 + $0x1b0] sm:$0xff]   ;;  %v3989_v9 = vld [vmem:[%s4531_s11 + $0x9c] ss:$36 sps:$4 sm:$0xff]   ;;  %v4011_v10 = vld [vmem:[#allocation5 + $0x1e8] sm:$0xff]  }
  0x5a   : > { %v4003_v5 = vld [vmem:[#allocation5 + $0x150] sm:$0xff]   ;;  %v4012_v11 = vld [vmem:[#allocation5 + $0x1a8] sm:$0xff]   ;;  %v3992_v13 = vld [vmem:[%s4531_s11 + $0x98] ss:$36 sps:$4 sm:$0xff]  }
  0x5b   : > { %v4004_v6 = vld [vmem:[#allocation5 + $0x110] sm:$0xff]   ;;  %v3997_v14 = vld [vmem:[%s4531_s11 + $0x1fc] ss:$36 sps:$4 sm:$0xff]  }
  0x5c   : > { %3294 = vmatpush3.bf16.msra.mxu0 %v3922_v15  ;;  %3815 = vmatpush3.bf16.msra.mxu1 %v3922_v15  ;;  %v3986_v7 = vld [vmem:[%s4531_s11 + $0x50] ss:$36 sps:$4 sm:$0xff]   ;;  %v4019_v15 = vld [vmem:[#allocation5 + $0x148] sm:$0xff]  }
  0x5d   : > { %3295 = vmatprep.subr.bf16.mxu0 %v3923_v16  ;;  %3808 = vmatprep.subr.bf16.mxu1 %v3923_v16  ;;  %v3987_v8 = vld [vmem:[%s4531_s11 + $0x1b4] ss:$36 sps:$4 sm:$0xff]   ;;  %v4020_v16 = vld [vmem:[#allocation5 + $0x108] sm:$0xff]  }
  0x5e   : > { %v3991_v12 = vld [vmem:[%s4531_s11 + $0x1b0] ss:$36 sps:$4 sm:$0xff]  }
  0x60   : > { %3296 = vmatpush3.bf16.msra.mxu0 %v3924_v17  ;;  %3816 = vmatpush3.bf16.msra.mxu1 %v3924_v17  ;;  %v3999_v17 = vld [vmem:[%s4531_s11 + $0xe4] ss:$36 sps:$4 sm:$0xff]  }
  0x61   : > { %3393 = vmatprep.subr.bf16.mxu1 %v3931_v18  ;;  %3505 = vmatprep.subr.bf16.mxu0 %v3932_v21  ;;  %v4027_v18 = vld [vmem:[#allocation5 + $0x1e0] sm:$0xff]  }
  0x62   : > { %v4029_v21 = vld [vmem:[#allocation5 + $0x140] sm:$0xff]  }
  0x63   : > { %1784 = vmatmul.mubr.bf16.vlgmr.msra.gmra.mxu0 %v3925_v19  ;;  %1880 = vmatmul.mubr.bf16.vlgmr.msra.gmra.mxu1 %v3928_v20  ;;  %v4028_v19 = vld [vmem:[#allocation5 + $0x1a0] sm:$0xff]   ;;  %v4001_v20 = vld [vmem:[%s4531_s11 + $0x1f8] ss:$36 sps:$4 sm:$0xff]  }
  0x64   : > { %3394 = vmatpush3.bf16.msra.mxu1 %v3933_v22  ;;  %3506 = vmatpush3.bf16.msra.mxu0 %v3934_v23  ;;  %v4030_v22 = vld [vmem:[#allocation5 + $0x100] sm:$0xff]  }
  0x65   : > { %3395 = vmatprep.subr.bf16.mxu1 %v3935_v24  ;;  %1791 = vmatprep.mubr.bf16.mxu0 %v3937_v25  ;;  %v4002_v23 = vld [vmem:[%s4531_s11 + $0xe0] ss:$36 sps:$4 sm:$0xff]   ;;  %v4007_v25 = vld [vmem:[%s4531_s11 + $0x12c] ss:$36 sps:$4 sm:$0xff]  }
  0x66   : > { %1887 = vmatprep.mubr.bf16.mxu1 %v3939_v26  ;;  %3507 = vmatprep.subr.bf16.mxu0 %v3946_v27  ;;  %v4005_v24 = vld [vmem:[%s4531_s11 + $0x244] ss:$36 sps:$4 sm:$0xff]   ;;  %v4043_v26 = vld [vmem:[#allocation5 + $0x1d8] sm:$0xff]  }
  0x67   : > { %v4009_v27 = vld [vmem:[%s4531_s11 + $0x240] ss:$36 sps:$4 sm:$0xff]  }
  0x68   : > { %3396 = vmatpush3.bf16.msra.mxu1 %v3936_v28  ;;  %3508 = vmatpush3.bf16.msra.mxu0 %v3948_v29  ;;  %v4044_v28 = vld [vmem:[#allocation5 + $0x238] sm:$0xff]  }
  0x69   : > { %3397 = vmatprep.subr.bf16.mxu1 %v3943_v32  ;;  %3509 = vmatprep.subr.bf16.mxu0 %v3966_v41  ;;  %v4045_v29 = vld [vmem:[#allocation5 + $0x198] sm:$0xff]   ;;  %v4073_v41 = vld [vmem:[#allocation5 + $0x1c8] sm:$0xff]  }
  0x6a   : > { %v4015_v32 = vld [vmem:[%s4531_s11 + $0x174] ss:$36 sps:$4 sm:$0xff]  }
  0x6b   : > { %1792 = vmatmul.mubr.bf16.gmra.mxu0 %v3941_v30  ;;  %1888 = vmatmul.mubr.bf16.gmra.mxu1 %v3942_v31  ;;  %v4010_v30 = vld [vmem:[%s4531_s11 + $0x128] ss:$36 sps:$4 sm:$0xff]  }
  0x6c   : > { %3398 = vmatpush3.bf16.msra.mxu1 %v3944_v33  ;;  %1799 = vmatprep.mubr.bf16.mxu0 %v3949_v35  ;;  %v4013_v31 = vld [vmem:[%s4531_s11 + $0x28c] ss:$36 sps:$4 sm:$0xff]  }
  0x6d   : > { %3399 = vmatprep.subr.bf16.mxu1 %v3945_v34  ;;  %1895 = vmatprep.mubr.bf16.mxu1 %v3951_v36  ;;  %v4058_v33 = vld [vmem:[#allocation5 + $0x1d0] sm:$0xff]   ;;  %v4017_v34 = vld [vmem:[%s4531_s11 + $0x288] ss:$36 sps:$4 sm:$0xff]  }
  0x6e   : > { %3510 = vmatpush3.bf16.msra.mxu0 %v3968_v44  ;;  %v4018_v35 = vld [vmem:[%s4531_s11 + $0x170] ss:$36 sps:$4 sm:$0xff]   ;;  %v4033_v44 = vld [vmem:[%s4531_s11 + $0x204] ss:$36 sps:$4 sm:$0xff]  }
  0x6f   : > { %3511 = vmatprep.subr.bf16.mxu0 %v3979_v54  ;;  %v4060_v36 = vld [vmem:[#allocation5 + $0x190] sm:$0xff]   ;;  %v4048_v54 = vld [vmem:[%s4531_s11 + $0x5c] ss:$36 sps:$4 sm:$0xff]  }
  0x70   : > { %3400 = vmatpush3.bf16.msra.mxu1 %v3947_v37  ;;  %v4021_v37 = vld [vmem:[%s4531_s11 + $0x2d4] ss:$36 sps:$4 sm:$0xff]  }
  0x71   : > { %3401 = vmatprep.subr.bf16.mxu1 %v3955_v38  ;;  %v4023_v38 = vld [vmem:[%s4531_s11 + $0x1bc] ss:$36 sps:$4 sm:$0xff]  }
  0x72   : > { %3512 = vmatpush3.bf16.msra.mxu0 %v3980_v55  ;;  %v4059_v55 = vld [vmem:[#allocation5 + $0x230] sm:$0xff]  }
  0x73   : > { %1800 = vmatmul.mubr.bf16.gmra.mxu0 %v3953_v39  ;;  %1896 = vmatmul.mubr.bf16.gmra.mxu1 %v3954_v40  ;;  %v4025_v39 = vld [vmem:[%s4531_s11 + $0x2d0] ss:$36 sps:$4 sm:$0xff]   ;;  %v4026_v40 = vld [vmem:[%s4531_s11 + $0x1b8] ss:$36 sps:$4 sm:$0xff]  }
  0x74   : > { %3402 = vmatpush3.bf16.msra.mxu1 %v3956_v42  ;;  %1807 = vmatprep.mubr.bf16.mxu0 %v3959_v45  ;;  %v4031_v42 = vld [vmem:[%s4531_s11 + $0x31c] ss:$36 sps:$4 sm:$0xff]  }
  0x75   : > { %3403 = vmatprep.subr.bf16.mxu1 %v3957_v43  ;;  %1903 = vmatprep.mubr.bf16.mxu1 %v3961_v46  ;;  %v4075_v43 = vld [vmem:[#allocation5 + $0x188] sm:$0xff]   ;;  %v4035_v45 = vld [vmem:[%s4531_s11 + $0x318] ss:$36 sps:$4 sm:$0xff]   ;;  %v4036_v46 = vld [vmem:[%s4531_s11 + $0x200] ss:$36 sps:$4 sm:$0xff]  }
  0x76   : > { %3513 = vmatprep.subr.bf16.mxu0 %v3993_v63  ;;  %v4056_v63 = vld [vmem:[%s4531_s11 + $0x2d8] ss:$36 sps:$4 sm:$0xff]  }
  0x77   : > { %3514 = vmatpush3.bf16.msra.mxu0 %v3995_v1  ;;  %v4061_v1 = vld [vmem:[%s4531_s11 + $0x324] ss:$36 sps:$4 sm:$0xff]  }
  0x78   : > { %3404 = vmatpush3.bf16.msra.mxu1 %v3958_v47  ;;  %3515 = vmatprep.subr.bf16.mxu0 %v4003_v5  ;;  %v4088_v47 = vld [vmem:[#allocation5 + $0x1c0] sm:$0xff]   ;;  %v4066_v5 = vld [vmem:[%s4531_s11 + $0xe8] ss:$36 sps:$4 sm:$0xff]  }
  0x79   : > { %3405 = vmatprep.subr.bf16.mxu1 %v3965_v50  ;;  %v4041_v50 = vld [vmem:[%s4531_s11 + $0x14] ss:$36 sps:$4 sm:$0xff]  }
  0x7b   : > { %1808 = vmatmul.mubr.bf16.gmra.mxu0 %v3963_v48  ;;  %1904 = vmatmul.mubr.bf16.gmra.mxu1 %v3964_v49  ;;  %v4037_v48 = vld [vmem:[%s4531_s11 + $0x24c] ss:$36 sps:$4 sm:$0xff]   ;;  %v4090_v49 = vld [vmem:[#allocation5 + $0x180] sm:$0xff]  }
  0x7c   : > { %3406 = vmatpush3.bf16.msra.mxu1 %v3967_v51  ;;  %1815 = vmatprep.mubr.bf16.mxu0 %v3971_v52  ;;  %v4039_v51 = vld [vmem:[%s4531_s11 + $0x10] ss:$36 sps:$4 sm:$0xff]   ;;  %v4042_v52 = vld [vmem:[%s4531_s11 + $0x248] ss:$36 sps:$4 sm:$0xff]  }
  0x7d   : > { %3407 = vmatprep.subr.bf16.mxu1 %v3969_v53  ;;  %1944 = vmatprep.mubr.bf16.mxu1 %v3975_v56  ;;  %v4046_v53 = vld [vmem:[%s4531_s11 + $0x294] ss:$36 sps:$4 sm:$0xff]   ;;  %v4074_v56 = vld [vmem:[#allocation5 + $0x228] sm:$0xff]  }
  0x7e   : > { %3516 = vmatpush3.bf16.msra.mxu0 %v4004_v6  ;;  %v4129_v6 = vld [vmem:[#allocation5 + $0x208] sm:$0xff]  }
  0x7f   : > { %3517 = vmatprep.subr.bf16.mxu0 %v4019_v15  ;;  %v4081_v15 = vld [vmem:[%s4531_s11 + $0x178] ss:$36 sps:$4 sm:$0xff]  }
  0x80   : > { %3408 = vmatpush3.bf16.msra.mxu1 %v3970_v57  ;;  %v4050_v57 = vld [vmem:[%s4531_s11 + $0x290] ss:$36 sps:$4 sm:$0xff]  }
  0x81   : > { %3617 = vmatprep.subr.bf16.mxu1 %v3977_v60  ;;  %v4054_v60 = vld [vmem:[%s4531_s11 + $0xa4] ss:$36 sps:$4 sm:$0xff]  }
  0x82   : > { %3518 = vmatpush3.bf16.msra.mxu0 %v4020_v16  ;;  %v4082_v16 = vld [vmem:[%s4531_s11 + $0x3fc] ss:$36 sps:$4 sm:$0xff]  }
  0x83   : > { %1816 = vmatmul.mubr.bf16.gmra.mxu0 %v3976_v59  ;;  %1945 = vmatmul.mubr.bf16.vlgmr.msra.gmra.mxu1 %v3973_v58  ;;  %v4051_v58 = vld [vmem:[%s4531_s11 + $0x58] ss:$36 sps:$4 sm:$0xff]  }
  0x84   : > { %3618 = vmatpush3.bf16.msra.mxu1 %v3978_v61  ;;  %1823 = vmatprep.mubr.bf16.mxu0 %v3981_v62  ;;  %v4052_v59 = vld [vmem:[%s4531_s11 + $0x2dc] ss:$36 sps:$4 sm:$0xff]  }
  0x85   : > { %1952 = vmatprep.mubr.bf16.mxu1 %v3983_v0  ;;  %3619 = vmatprep.subr.bf16.mxu1 %v3994_v2  ;;  %v4089_v61 = vld [vmem:[#allocation5 + $0x220] sm:$0xff]   ;;  %v4103_v62 = vld [vmem:[#allocation5 + $0x218] sm:$0xff]   ;;  %v4063_v2 = vld [vmem:[%s4531_s11 + $0xec] ss:$36 sps:$4 sm:$0xff]  }
  0x86   : > { %3519 = vmatprep.subr.bf16.mxu0 %v4029_v21  ;;  %v4057_v0 = vld [vmem:[%s4531_s11 + $0xa0] ss:$36 sps:$4 sm:$0xff]   ;;  %v4093_v21 = vld [vmem:[%s4531_s11 + $0x20c] ss:$36 sps:$4 sm:$0xff]  }
  0x87   : > { %3520 = vmatpush3.bf16.msra.mxu0 %v4030_v22  ;;  %v4095_v22 = vld [vmem:[%s4531_s11 + $0x440] ss:$36 sps:$4 sm:$0xff]  }
  0x88   : > { %3620 = vmatpush3.bf16.msra.mxu1 %v3996_v3  ;;  %3753 = vmatprep.subr.bf16.mxu0 %v4044_v28  ;;  %v4116_v3 = vld [vmem:[#allocation5 + $0x210] sm:$0xff]  }
  0x89   : > { %3621 = vmatprep.subr.bf16.mxu1 %v4011_v10  ;;  %v4071_v10 = vld [vmem:[%s4531_s11 + $0x368] ss:$36 sps:$4 sm:$0xff]  }
  0x8b   : > { %1824 = vmatmul.mubr.bf16.gmra.mxu0 %v3985_v4  ;;  %1953 = vmatmul.mubr.bf16.gmra.mxu1 %v3986_v7  ;;  %v4065_v4 = vld [vmem:[%s4531_s11 + $0x320] ss:$36 sps:$4 sm:$0xff]   ;;  %v4067_v7 = vld [vmem:[%s4531_s11 + $0x36c] ss:$36 sps:$4 sm:$0xff]  }
  0x8c   : > { %1831 = vmatprep.mubr.bf16.mxu0 %v3987_v8  ;;  %1960 = vmatprep.mubr.bf16.mxu1 %v3989_v9  ;;  %v4069_v8 = vld [vmem:[%s4531_s11 + $0x134] ss:$36 sps:$4 sm:$0xff]   ;;  %v4142_v9 = vld [vmem:[#allocation5 + $0x200] sm:$0xff]  }
  0x8d   : > { %3622 = vmatpush3.bf16.msra.mxu1 %v4012_v11  ;;  %v4072_v11 = vld [vmem:[%s4531_s11 + $0x130] ss:$36 sps:$4 sm:$0xff]  }
  0x8e   : > { %3623 = vmatprep.subr.bf16.mxu1 %v4027_v18  ;;  %v4086_v18 = vld [vmem:[%s4531_s11 + $0x3f8] ss:$36 sps:$4 sm:$0xff]  }
  0x91   : > { %3624 = vmatpush3.bf16.msra.mxu1 %v4028_v19  ;;  %v4087_v19 = vld [vmem:[%s4531_s11 + $0x1c0] ss:$36 sps:$4 sm:$0xff]  }
  0x92   : > { %3625 = vmatprep.subr.bf16.mxu1 %v4043_v26  ;;  %v4099_v26 = vld [vmem:[%s4531_s11 + $0x18] ss:$36 sps:$4 sm:$0xff]  }
  0x93   : > { %1832 = vmatmul.mubr.bf16.gmra.mxu0 %v3991_v12  ;;  %1961 = vmatmul.mubr.bf16.gmra.mxu1 %v3992_v13  ;;  %v4076_v12 = vld [vmem:[%s4531_s11 + $0x3b4] ss:$36 sps:$4 sm:$0xff]   ;;  %v4078_v13 = vld [vmem:[%s4531_s11 + $0x17c] ss:$36 sps:$4 sm:$0xff]  }
  0x94   : > { %1839 = vmatprep.mubr.bf16.mxu0 %v3997_v14  ;;  %1968 = vmatprep.mubr.bf16.mxu1 %v3999_v17  ;;  %v4080_v14 = vld [vmem:[%s4531_s11 + $0x3b0] ss:$36 sps:$4 sm:$0xff]   ;;  %v4084_v17 = vld [vmem:[%s4531_s11 + $0x1c4] ss:$36 sps:$4 sm:$0xff]  }
  0x95   : > { %3626 = vmatpush3.bf16.msra.mxu1 %v4045_v29  ;;  %v4106_v29 = vld [vmem:[%s4531_s11 + $0x64] ss:$36 sps:$4 sm:$0xff]  }
  0x96   : > { %3627 = vmatprep.subr.bf16.mxu1 %v4058_v33  ;;  %v4112_v33 = vld [vmem:[%s4531_s11 + $0xac] ss:$36 sps:$4 sm:$0xff]  }
  0x99   : > { %3628 = vmatpush3.bf16.msra.mxu1 %v4060_v36  ;;  %v4117_v36 = vld [vmem:[%s4531_s11 + $0x32c] ss:$36 sps:$4 sm:$0xff]  }
  0x9a   : > { %3629 = vmatprep.subr.bf16.mxu1 %v4073_v41  ;;  %v4125_v41 = vld [vmem:[%s4531_s11 + $0x13c] ss:$36 sps:$4 sm:$0xff]  }
  0x9b   : > { %1840 = vmatmul.mubr.bf16.gmra.mxu0 %v4001_v20  ;;  %1969 = vmatmul.mubr.bf16.gmra.mxu1 %v4002_v23  ;;  %v4091_v20 = vld [vmem:[%s4531_s11 + $0x444] ss:$36 sps:$4 sm:$0xff]  }
  0x9c   : > { %1847 = vmatprep.mubr.bf16.mxu0 %v4005_v24  ;;  %1976 = vmatprep.mubr.bf16.mxu1 %v4007_v25  ;;  %v4096_v23 = vld [vmem:[%s4531_s11 + $0x208] ss:$36 sps:$4 sm:$0xff]   ;;  %v4097_v24 = vld [vmem:[%s4531_s11 + $0x254] ss:$36 sps:$4 sm:$0xff]   ;;  %v4101_v25 = vld [vmem:[%s4531_s11 + $0x1c] ss:$36 sps:$4 sm:$0xff]  }
  0x9d   : > { %3630 = vmatpush3.bf16.msra.mxu1 %v4075_v43  ;;  %v4128_v43 = vld [vmem:[%s4531_s11 + $0x138] ss:$36 sps:$4 sm:$0xff]  }
  0x9e   : > { %3631 = vmatprep.subr.bf16.mxu1 %v4088_v47 }
  0xa1   : > { %3632 = vmatpush3.bf16.msra.mxu1 %v4090_v49 }
  0xa3   : > { %1848 = vmatmul.mubr.bf16.gmra.mxu0 %v4009_v27  ;;  %1977 = vmatmul.mubr.bf16.gmra.mxu1 %v4010_v30  ;;  %v4102_v27 = vld [vmem:[%s4531_s11 + $0x250] ss:$36 sps:$4 sm:$0xff]   ;;  %v4108_v30 = vld [vmem:[%s4531_s11 + $0x298] ss:$36 sps:$4 sm:$0xff]  }
  0xa4   : > { %1855 = vmatprep.mubr.bf16.mxu0 %v4013_v31  ;;  %1984 = vmatprep.mubr.bf16.mxu1 %v4015_v32  ;;  %v4109_v31 = vld [vmem:[%s4531_s11 + $0x60] ss:$36 sps:$4 sm:$0xff]  }
  0xa5   : > { %v4110_v32 = vld [vmem:[%s4531_s11 + $0x2e4] ss:$36 sps:$4 sm:$0xff]  }
  0xab   : > { %1856 = vmatmul.mubr.bf16.gmra.mxu0 %v4017_v34  ;;  %1985 = vmatmul.mubr.bf16.gmra.mxu1 %v4018_v35  ;;  %v4114_v34 = vld [vmem:[%s4531_s11 + $0x2e0] ss:$36 sps:$4 sm:$0xff]   ;;  %v4115_v35 = vld [vmem:[%s4531_s11 + $0xa8] ss:$36 sps:$4 sm:$0xff]  }
  0xac   : > { %1863 = vmatprep.mubr.bf16.mxu0 %v4021_v37  ;;  %1992 = vmatprep.mubr.bf16.mxu1 %v4023_v38  ;;  %v4119_v37 = vld [vmem:[%s4531_s11 + $0xf4] ss:$36 sps:$4 sm:$0xff]   ;;  %v4121_v38 = vld [vmem:[%s4531_s11 + $0x328] ss:$36 sps:$4 sm:$0xff]  }
  0xb3   : > { %1864 = vmatmul.mubr.bf16.gmra.mxu0 %v4025_v39  ;;  %1993 = vmatmul.mubr.bf16.gmra.mxu1 %v4026_v40  ;;  %v4122_v39 = vld [vmem:[%s4531_s11 + $0xf0] ss:$36 sps:$4 sm:$0xff]  }
  0xb4   : > { %1871 = vmatprep.mubr.bf16.mxu0 %v4031_v42  ;;  %2000 = vmatprep.mubr.bf16.mxu1 %v4033_v44  ;;  %v4123_v40 = vld [vmem:[%s4531_s11 + $0x374] ss:$36 sps:$4 sm:$0xff]   ;;  %v4130_v44 = vld [vmem:[%s4531_s11 + $0x3bc] ss:$36 sps:$4 sm:$0xff]  }
  0xb5   : > { %v4127_v42 = vld [vmem:[%s4531_s11 + $0x370] ss:$36 sps:$4 sm:$0xff]  }
  0xbb   : > { %1872 = vmatmul.mubr.bf16.gmra.mxu0 %v4035_v45  ;;  %2001 = vmatmul.mubr.bf16.gmra.mxu1 %v4036_v46  ;;  %v4132_v45 = vld [vmem:[%s4531_s11 + $0x184] ss:$36 sps:$4 sm:$0xff]  }
  0xbc   : > { %2008 = vmatprep.mubr.bf16.mxu1 %v4037_v48  ;;  %2105 = vmatprep.mubr.bf16.mxu0 %v4041_v50 }
  0xc3   : > { %2009 = vmatmul.mubr.bf16.gmra.mxu1 %v4042_v52  ;;  %2106 = vmatmul.mubr.bf16.vlgmr.msra.gmra.mxu0 %v4039_v51 }
  0xc4   : > { %3754 = vmatpush3.bf16.msra.mxu0 %v4044_v28  ;;  %2016 = vmatprep.mubr.bf16.mxu1 %v4046_v53  ;;  %v4104_v28 = vld [vmem:[%s4531_s11 + $0x29c] ss:$36 sps:$4 sm:$0xff]  }
  0xc5   : > { %2113 = vmatprep.mubr.bf16.mxu0 %v4048_v54  ;;  %3755 = vmatprep.subr.bf16.mxu0 %v4059_v55  ;;  %v4134_v54 = vld [vmem:[%s4531_s11 + $0x3b8] ss:$36 sps:$4 sm:$0xff]  }
  0xc8   : > { %3756 = vmatpush3.bf16.msra.mxu0 %v4059_v55  ;;  %v4135_v55 = vld [vmem:[%s4531_s11 + $0x180] ss:$36 sps:$4 sm:$0xff]  }
  0xc9   : > { %3757 = vmatprep.subr.bf16.mxu0 %v4074_v56 }
  0xcb   : > { %2017 = vmatmul.mubr.bf16.gmra.mxu1 %v4050_v57  ;;  %2114 = vmatmul.mubr.bf16.gmra.mxu0 %v4051_v58  ;;  %v4138_v57 = vld [vmem:[%s4531_s11 + $0x1cc] ss:$36 sps:$4 sm:$0xff]  }
  0xcc   : > { %2024 = vmatprep.mubr.bf16.mxu1 %v4052_v59  ;;  %2121 = vmatprep.mubr.bf16.mxu0 %v4054_v60 }
  0xcd   : > { %3758 = vmatpush3.bf16.msra.mxu0 %v4074_v56  ;;  %v4136_v56 = vld [vmem:[%s4531_s11 + $0x404] ss:$36 sps:$4 sm:$0xff]  }
  0xce   : > { %3759 = vmatprep.subr.bf16.mxu0 %v4089_v61 }
  0xd1   : > { %3760 = vmatpush3.bf16.msra.mxu0 %v4089_v61 }
  0xd2   : > { %3761 = vmatprep.subr.bf16.mxu0 %v4103_v62 }
  0xd3   : > { %2025 = vmatmul.mubr.bf16.gmra.mxu1 %v4056_v63  ;;  %2122 = vmatmul.mubr.bf16.gmra.mxu0 %v4057_v0 }
  0xd4   : > { %2032 = vmatprep.mubr.bf16.mxu1 %v4061_v1  ;;  %2129 = vmatprep.mubr.bf16.mxu0 %v4063_v2 }
  0xd5   : > { %3762 = vmatpush3.bf16.msra.mxu0 %v4103_v62 }
  0xd6   : > { %3763 = vmatprep.subr.bf16.mxu0 %v4116_v3 }
  0xd9   : > { %3764 = vmatpush3.bf16.msra.mxu0 %v4116_v3 }
  0xda   : > { %3765 = vmatprep.subr.bf16.mxu0 %v4129_v6 }
  0xdb   : > { %2033 = vmatmul.mubr.bf16.gmra.mxu1 %v4065_v4  ;;  %2130 = vmatmul.mubr.bf16.gmra.mxu0 %v4066_v5 }
  0xdc   : > { %2040 = vmatprep.mubr.bf16.mxu1 %v4067_v7  ;;  %2137 = vmatprep.mubr.bf16.mxu0 %v4069_v8  ;;  %v4141_v7 = vld [vmem:[%s4531_s11 + $0x1c8] ss:$36 sps:$4 sm:$0xff]  }
  0xdd   : > { %3766 = vmatpush3.bf16.msra.mxu0 %v4129_v6  ;;  %v4140_v6 = vld [vmem:[%s4531_s11 + $0x400] ss:$36 sps:$4 sm:$0xff]   ;;  %v4143_v8 = vld [vmem:[%s4531_s11 + $0x44c] ss:$36 sps:$4 sm:$0xff]  }
  0xde   : > { %3767 = vmatprep.subr.bf16.mxu0 %v4142_v9 }
  0xe1   : > { %3768 = vmatpush3.bf16.msra.mxu0 %v4142_v9  ;;  %v4145_v9 = vld [vmem:[%s4531_s11 + $0x214] ss:$36 sps:$4 sm:$0xff]  }
  0xe3   : > { %2041 = vmatmul.mubr.bf16.gmra.mxu1 %v4071_v10  ;;  %2138 = vmatmul.mubr.bf16.gmra.mxu0 %v4072_v11 }
  0xe4   : > { %2048 = vmatprep.mubr.bf16.mxu1 %v4076_v12  ;;  %2145 = vmatprep.mubr.bf16.mxu0 %v4078_v13 }
  0xeb   : > { %2049 = vmatmul.mubr.bf16.gmra.mxu1 %v4080_v14  ;;  %2146 = vmatmul.mubr.bf16.gmra.mxu0 %v4081_v15 }
  0xec   : > { %2056 = vmatprep.mubr.bf16.mxu1 %v4082_v16  ;;  %2153 = vmatprep.mubr.bf16.mxu0 %v4084_v17 }
  0xf3   : > { %2057 = vmatmul.mubr.bf16.gmra.mxu1 %v4086_v18  ;;  %2154 = vmatmul.mubr.bf16.gmra.mxu0 %v4087_v19 }
  0xf4   : > { %2064 = vmatprep.mubr.bf16.mxu1 %v4091_v20  ;;  %2161 = vmatprep.mubr.bf16.mxu0 %v4093_v21 }
  0xfb   : > { %2065 = vmatmul.mubr.bf16.gmra.mxu1 %v4095_v22  ;;  %2162 = vmatmul.mubr.bf16.gmra.mxu0 %v4096_v23  ;;  %v4147_v22 = vld [vmem:[%s4531_s11 + $0x448] ss:$36 sps:$4 sm:$0xff]   ;;  %v4148_v23 = vld [vmem:[%s4531_s11 + $0x210] ss:$36 sps:$4 sm:$0xff]  }
  0xfc   : > { %2169 = vmatprep.mubr.bf16.mxu0 %v4097_v24  ;;  %2266 = vmatprep.mubr.bf16.mxu1 %v4101_v25  ;;  %v4151_v24 = vld [vmem:[%s4531_s11 + $0x25c] ss:$36 sps:$4 sm:$0xff]  }
  0xfd   : > { %v4152_v25 = vld [vmem:[%s4531_s11 + $0x20] ss:$36 sps:$4 sm:$0xff]  }
 0x103   : > { %2170 = vmatmul.mubr.bf16.gmra.mxu0 %v4102_v27  ;;  %2267 = vmatmul.mubr.bf16.vlgmr.msra.gmra.mxu1 %v4099_v26 }
 0x104   : > { %2177 = vmatprep.mubr.bf16.mxu0 %v4104_v28  ;;  %2274 = vmatprep.mubr.bf16.mxu1 %v4106_v29 }
 0x10b   : > { %2178 = vmatmul.mubr.bf16.gmra.mxu0 %v4108_v30  ;;  %2275 = vmatmul.mubr.bf16.gmra.mxu1 %v4109_v31 }
 0x10c   : > { %2185 = vmatprep.mubr.bf16.mxu0 %v4110_v32  ;;  %2282 = vmatprep.mubr.bf16.mxu1 %v4112_v33 }
 0x113   : > { %2186 = vmatmul.mubr.bf16.gmra.mxu0 %v4114_v34  ;;  %2283 = vmatmul.mubr.bf16.gmra.mxu1 %v4115_v35 }
 0x114   : > { %2193 = vmatprep.mubr.bf16.mxu0 %v4117_v36  ;;  %2290 = vmatprep.mubr.bf16.mxu1 %v4119_v37 }
 0x11b   : > { %2194 = vmatmul.mubr.bf16.gmra.mxu0 %v4121_v38  ;;  %2291 = vmatmul.mubr.bf16.gmra.mxu1 %v4122_v39  ;;  %v4149_v38 = vld [vmem:[%s4531_s11 + $0x258] ss:$36 sps:$4 sm:$0xff]   ;;  %v4153_v39 = vld [vmem:[%s4531_s11 + $0x68] ss:$36 sps:$4 sm:$0xff]  }
 0x11c   : > { %2201 = vmatprep.mubr.bf16.mxu0 %v4123_v40  ;;  %2298 = vmatprep.mubr.bf16.mxu1 %v4125_v41  ;;  %v4156_v40 = vld [vmem:[%s4531_s11 + $0x2a4] ss:$36 sps:$4 sm:$0xff]   ;;  %v4157_v41 = vld [vmem:[%s4531_s11 + $0xb0] ss:$36 sps:$4 sm:$0xff]  }
 0x123   : > { %v3297_v46 = vpop.f32.mrf.mxu0  ;;  %v3369_v47 = vpop.f32.mrf.mxu1  ;;  %2202 = vmatmul.mubr.bf16.gmra.mxu0 %v4127_v42  ;;  %2299 = vmatmul.mubr.bf16.gmra.mxu1 %v4128_v43 }
 0x124   : > { %2209 = vmatprep.mubr.bf16.mxu0 %v4130_v44  ;;  %2306 = vmatprep.mubr.bf16.mxu1 %v4132_v45 }
 0x125   : > { %v3298_v48 = vpop.f32.mrf.mxu0  ;;  %v3370_v49 = vpop.f32.mrf.mxu1 }
 0x126   : > { %v4643_v50 = vadd.f32 %v3298_v48, %v3297_v46  ;;  %v4645_v51 = vadd.f32 %v3370_v49, %v3369_v47 }
 0x127   : > { %v3300_v52 = vpop.f32.mrf.mxu0  ;;  %v3372_v53 = vpop.f32.mrf.mxu1 }
 0x129   : > { %v3301_v58 = vpop.f32.mrf.mxu0  ;;  %v3373_v59 = vpop.f32.mrf.mxu1 }
 0x12a   : > { %v4651_v60 = vadd.f32 %v3301_v58, %v3300_v52  ;;  %v4653_v61 = vadd.f32 %v3373_v59, %v3372_v53  ;;  %v4161_v59 = vld [vmem:[%s4531_s11 + $0x2ec] ss:$36 sps:$4 sm:$0xff]  }
 0x12b   : > { %v3303_v62 = vpop.f32.mrf.mxu0  ;;  %v3375_v63 = vpop.f32.mrf.mxu1  ;;  %2210 = vmatmul.mubr.bf16.gmra.mxu0 %v4134_v54  ;;  %2307 = vmatmul.mubr.bf16.gmra.mxu1 %v4135_v55 }
 0x12c   : > { %2217 = vmatprep.mubr.bf16.mxu0 %v4136_v56  ;;  %2314 = vmatprep.mubr.bf16.mxu1 %v4138_v57  ;;  %v4154_v56 = vld [vmem:[%s4531_s11 + $0x2a0] ss:$36 sps:$4 sm:$0xff]   ;;  %v4158_v57 = vld [vmem:[%s4531_s11 + $0xf8] ss:$36 sps:$4 sm:$0xff]  }
 0x12d   : > { %v3304_v0 = vpop.f32.mrf.mxu0  ;;  %v3376_v1 = vpop.f32.mrf.mxu1 }
 0x12e   : > { %v4655_v2 = vadd.f32 %v3304_v0, %v3303_v62  ;;  %v4657_v3 = vadd.f32 %v3376_v1, %v3375_v63  ;;  %v4162_v62 = vld [vmem:[%s4531_s11 + $0x140] ss:$36 sps:$4 sm:$0xff]  }
 0x12f   : > { %v3306_v4 = vpop.f32.mrf.mxu0  ;;  %v3378_v5 = vpop.f32.mrf.mxu1 }
 0x131   : > { %v3307_v10 = vpop.f32.mrf.mxu0  ;;  %v3379_v11 = vpop.f32.mrf.mxu1 }
 0x132   : > { %v4663_v12 = vadd.f32 %v3307_v10, %v3306_v4  ;;  %v4665_v13 = vadd.f32 %v3379_v11, %v3378_v5 }
 0x133   : > { %v3309_v14 = vpop.f32.mrf.mxu0  ;;  %v3381_v15 = vpop.f32.mrf.mxu1  ;;  %2218 = vmatmul.mubr.bf16.gmra.mxu0 %v4140_v6  ;;  %2315 = vmatmul.mubr.bf16.gmra.mxu1 %v4141_v7 }
 0x134   : > { %2225 = vmatprep.mubr.bf16.mxu0 %v4143_v8  ;;  %2322 = vmatprep.mubr.bf16.mxu1 %v4145_v9 }
 0x135   : > { %v3310_v16 = vpop.f32.mrf.mxu0  ;;  %v3382_v17 = vpop.f32.mrf.mxu1 }
 0x136   : > { %v4667_v18 = vadd.f32 %v3310_v16, %v3309_v14  ;;  %v4669_v19 = vadd.f32 %v3382_v17, %v3381_v15  ;;  %v4159_v15 = vld [vmem:[%s4531_s11 + $0x2e8] ss:$36 sps:$4 sm:$0xff]  }
 0x137   : > { %v3312_v20 = vpop.f32.mrf.mxu0  ;;  %v3384_v21 = vpop.f32.mrf.mxu1  ;;  %v4163_v16 = vld [vmem:[%s4531_s11 + $0x188] ss:$36 sps:$4 sm:$0xff]  }
 0x139   : > { %v3313_v26 = vpop.f32.mrf.mxu0  ;;  %v3385_v27 = vpop.f32.mrf.mxu1 }
 0x13a   : > { %v4675_v28 = vadd.f32 %v3313_v26, %v3312_v20  ;;  %v4677_v29 = vadd.f32 %v3385_v27, %v3384_v21  ;;  %v4166_v20 = vld [vmem:[%s4531_s11 + $0x334] ss:$36 sps:$4 sm:$0xff]  }
 0x13b   : > { %v3315_v30 = vpop.f32.mrf.mxu0  ;;  %v3387_v31 = vpop.f32.mrf.mxu1  ;;  %2226 = vmatmul.mubr.bf16.gmra.mxu0 %v4147_v22  ;;  %2323 = vmatmul.mubr.bf16.gmra.mxu1 %v4148_v23  ;;  %v4167_v21 = vld [vmem:[%s4531_s11 + $0x1d0] ss:$36 sps:$4 sm:$0xff]  }
 0x13c   : > { %2330 = vmatprep.mubr.bf16.mxu1 %v4151_v24  ;;  %3769 = vmatprep.mubr.bf16.mxu0 %v4152_v25 }
 0x13d   : > { %v3316_v32 = vpop.f32.mrf.mxu0  ;;  %v3388_v33 = vpop.f32.mrf.mxu1 }
 0x13e   : > { %v4679_v34 = vadd.f32 %v3316_v32, %v3315_v30  ;;  %v4681_v35 = vadd.f32 %v3388_v33, %v3387_v31 }
 0x13f   : > { %v3318_v36 = vpop.f32.mrf.mxu0  ;;  %v3390_v37 = vpop.f32.mrf.mxu1 }
 0x141   : > { %v3319_v42 = vpop.f32.mrf.mxu0  ;;  %v3391_v43 = vpop.f32.mrf.mxu1 }
 0x142   : > { %v4687_v44 = vadd.f32 %v3319_v42, %v3318_v36  ;;  %v4689_v45 = vadd.f32 %v3391_v43, %v3390_v37  ;;  %v4164_v37 = vld [vmem:[%s4531_s11 + $0x330] ss:$36 sps:$4 sm:$0xff]  }
 0x143   : > { %v3321_v46 = vpop.f32.mrf.mxu0  ;;  %v3409_v47 = vpop.f32.mrf.mxu1  ;;  %2331 = vmatmul.mubr.bf16.gmra.mxu1 %v4149_v38  ;;  %3770 = vmatmul.mubr.bf16.vlgmr.msra.gmra.mxu0 %v4153_v39  ;;  %v4168_v38 = vld [vmem:[%s4531_s11 + $0x218] ss:$36 sps:$4 sm:$0xff]  }
 0x144   : > { %2338 = vmatprep.mubr.bf16.mxu1 %v4156_v40  ;;  %3773 = vmatprep.mubr.bf16.mxu0 %v4157_v41  ;;  %v4171_v40 = vld [vmem:[%s4531_s11 + $0x37c] ss:$36 sps:$4 sm:$0xff]  }
 0x145   : > { %v3322_v48 = vpop.f32.mrf.mxu0  ;;  %v3410_v49 = vpop.f32.mrf.mxu1  ;;  %v4172_v41 = vld [vmem:[%s4531_s11 + $0x260] ss:$36 sps:$4 sm:$0xff]  }
 0x146   : > { %v4691_v52 = vadd.f32 %v3322_v48, %v3321_v46  ;;  %v3411_v53 = vadd.f32 %v3410_v49, %v3409_v47 }
 0x147   : > { %v3324_v54 = vpop.f32.mrf.mxu0  ;;  %v3412_v55 = vpop.f32.mrf.mxu1 }
 0x148   : > { %v4696_v58 = vadd.f32 %v3411_v53, %v4643_v50 }
 0x149   : > { %v3325_v63 = vpop.f32.mrf.mxu0  ;;  %v3413_v0 = vpop.f32.mrf.mxu1 }
 0x14a   : > { %v4700_v1 = vadd.f32 %v3325_v63, %v3324_v54  ;;  %v3414_v4 = vadd.f32 %v3413_v0, %v3412_v55  ;;  %v4176_v0 = vld [vmem:[%s4531_s11 + $0x3c4] ss:$36 sps:$4 sm:$0xff]  }
 0x14b   : > { %v3327_v5 = vpop.f32.mrf.mxu0  ;;  %v3415_v6 = vpop.f32.mrf.mxu1  ;;  %2339 = vmatmul.mubr.bf16.gmra.mxu1 %v4154_v56  ;;  %3774 = vmatmul.mubr.bf16.gmra.mxu0 %v4158_v57 }
 0x14c   : > { %v4703_v7 = vadd.f32 %v3414_v4, %v4651_v60  ;;  %2346 = vmatprep.mubr.bf16.mxu1 %v4161_v59  ;;  %3777 = vmatprep.mubr.bf16.mxu0 %v4162_v62  ;;  %v4169_v59 = vld [vmem:[%s4531_s11 + $0x378] ss:$36 sps:$4 sm:$0xff]   ;;  %v4173_v62 = vld [vmem:[%s4531_s11 + $0x2a8] ss:$36 sps:$4 sm:$0xff]   ;;  %v4177_v4 = vld [vmem:[%s4531_s11 + $0x2f0] ss:$36 sps:$4 sm:$0xff]  }
 0x14d   : > { %v3328_v50 = vpop.f32.mrf.mxu0  ;;  %v3416_v8 = vpop.f32.mrf.mxu1 }
 0x14e   : > { %v4705_v9 = vadd.f32 %v3328_v50, %v3327_v5  ;;  %v3417_v10 = vadd.f32 %v3416_v8, %v3415_v6 }
 0x14f   : > { %v3330_v11 = vpop.f32.mrf.mxu0  ;;  %v3418_v14 = vpop.f32.mrf.mxu1 }
 0x150   : > { %v4710_v17 = vadd.f32 %v3417_v10, %v4655_v2 }
 0x151   : > { %v3331_v22 = vpop.f32.mrf.mxu0  ;;  %v3419_v23 = vpop.f32.mrf.mxu1 }
 0x152   : > { %v4714_v60 = vadd.f32 %v3331_v22, %v3330_v11  ;;  %v3420_v24 = vadd.f32 %v3419_v23, %v3418_v14  ;;  %v4174_v22 = vld [vmem:[%s4531_s11 + $0x3c0] ss:$36 sps:$4 sm:$0xff]   ;;  %v4178_v23 = vld [vmem:[%s4531_s11 + $0x338] ss:$36 sps:$4 sm:$0xff]  }
 0x153   : > { %v3333_v25 = vpop.f32.mrf.mxu0  ;;  %v3421_v26 = vpop.f32.mrf.mxu1  ;;  %2347 = vmatmul.mubr.bf16.gmra.mxu1 %v4159_v15  ;;  %3778 = vmatmul.mubr.bf16.gmra.mxu0 %v4163_v16 }
 0x154   : > { %v4717_v27 = vadd.f32 %v3420_v24, %v4663_v12  ;;  %2354 = vmatprep.mubr.bf16.mxu1 %v4166_v20  ;;  %3781 = vmatprep.mubr.bf16.mxu0 %v4167_v21 }
 0x155   : > { %v3334_v2 = vpop.f32.mrf.mxu0  ;;  %v3422_v30 = vpop.f32.mrf.mxu1 }
 0x156   : > { %v4719_v31 = vadd.f32 %v3334_v2, %v3333_v25  ;;  %v3423_v32 = vadd.f32 %v3422_v30, %v3421_v26  ;;  %v4181_v25 = vld [vmem:[%s4531_s11 + $0x40c] ss:$36 sps:$4 sm:$0xff]   ;;  %v4182_v26 = vld [vmem:[%s4531_s11 + $0x380] ss:$36 sps:$4 sm:$0xff]  }
 0x157   : > { %v3336_v33 = vpop.f32.mrf.mxu0  ;;  %v3424_v36 = vpop.f32.mrf.mxu1 }
 0x158   : > { %v4724_v39 = vadd.f32 %v3423_v32, %v4667_v18 }
 0x159   : > { %v3337_v42 = vpop.f32.mrf.mxu0  ;;  %v3425_v43 = vpop.f32.mrf.mxu1 }
 0x15a   : > { %v4728_v12 = vadd.f32 %v3337_v42, %v3336_v33  ;;  %v3426_v46 = vadd.f32 %v3425_v43, %v3424_v36 }
 0x15b   : > { %v3339_v47 = vpop.f32.mrf.mxu0  ;;  %v3427_v48 = vpop.f32.mrf.mxu1  ;;  %2355 = vmatmul.mubr.bf16.gmra.mxu1 %v4164_v37  ;;  %3782 = vmatmul.mubr.bf16.gmra.mxu0 %v4168_v38 }
 0x15c   : > { %v4731_v49 = vadd.f32 %v3426_v46, %v4675_v28  ;;  %2362 = vmatprep.mubr.bf16.mxu1 %v4171_v40  ;;  %3785 = vmatprep.mubr.bf16.mxu0 %v4172_v41  ;;  %v4179_v46 = vld [vmem:[%s4531_s11 + $0x408] ss:$36 sps:$4 sm:$0xff]  }
 0x15d   : > { %v3340_v18 = vpop.f32.mrf.mxu0  ;;  %v3428_v53 = vpop.f32.mrf.mxu1 }
 0x15e   : > { %v4733_v54 = vadd.f32 %v3340_v18, %v3339_v47  ;;  %v3429_v55 = vadd.f32 %v3428_v53, %v3427_v48  ;;  %v4183_v47 = vld [vmem:[%s4531_s11 + $0x3c8] ss:$36 sps:$4 sm:$0xff]   ;;  %v4186_v18 = vld [vmem:[%s4531_s11 + $0x454] ss:$36 sps:$4 sm:$0xff]  }
 0x15f   : > { %v3342_v56 = vpop.f32.mrf.mxu0  ;;  %v3430_v57 = vpop.f32.mrf.mxu1  ;;  %v4187_v53 = vld [vmem:[%s4531_s11 + $0x410] ss:$36 sps:$4 sm:$0xff]  }
 0x160   : > { %v4738_v63 = vadd.f32 %v3429_v55, %v4679_v34 }
 0x161   : > { %v3343_v5 = vpop.f32.mrf.mxu0  ;;  %v3431_v6 = vpop.f32.mrf.mxu1 }
 0x162   : > { %v4742_v28 = vadd.f32 %v3343_v5, %v3342_v56  ;;  %v3432_v50 = vadd.f32 %v3431_v6, %v3430_v57 }
 0x163   : > { %v3345_v8 = vpop.f32.mrf.mxu0  ;;  %v3433_v10 = vpop.f32.mrf.mxu1  ;;  %2363 = vmatmul.mubr.bf16.gmra.mxu1 %v4169_v59  ;;  %3786 = vmatmul.mubr.bf16.gmra.mxu0 %v4173_v62 }
 0x164   : > { %v4745_v11 = vadd.f32 %v3432_v50, %v4687_v44  ;;  %2370 = vmatprep.mubr.bf16.mxu1 %v4176_v0  ;;  %3789 = vmatprep.mubr.bf16.mxu0 %v4177_v4 }
 0x165   : > { %v3346_v34 = vpop.f32.mrf.mxu0  ;;  %v3434_v14 = vpop.f32.mrf.mxu1 }
 0x166   : > { %v4747_v15 = vadd.f32 %v3346_v34, %v3345_v8  ;;  %v3435_v16 = vadd.f32 %v3434_v14, %v3433_v10  ;;  %v4184_v10 = vld [vmem:[%s4531_s11 + $0x450] ss:$36 sps:$4 sm:$0xff]   ;;  %v4188_v34 = vld [vmem:[%s4531_s11 + $0x458] ss:$36 sps:$4 sm:$0xff]  }
 0x167   : > { %v3348_v20 = vpop.f32.mrf.mxu0  ;;  %v3436_v21 = vpop.f32.mrf.mxu1 }
 0x168   : > { %v4752_v24 = vadd.f32 %v3435_v16, %v4691_v52 }
 0x169   : > { %v3349_v2 = vpop.f32.mrf.mxu0  ;;  %v3437_v30 = vpop.f32.mrf.mxu1 }
 0x16a   : > { %v4756_v44 = vadd.f32 %v3349_v2, %v3348_v20  ;;  %v3438_v32 = vadd.f32 %v3437_v30, %v3436_v21 }
 0x16b   : > { %v3351_v33 = vpop.f32.mrf.mxu0  ;;  %v3439_v36 = vpop.f32.mrf.mxu1  ;;  %2371 = vmatmul.mubr.bf16.gmra.mxu1 %v4174_v22  ;;  %3790 = vmatmul.mubr.bf16.gmra.mxu0 %v4178_v23 }
 0x16c   : > { %v4759_v37 = vadd.f32 %v3438_v32, %v4700_v1  ;;  %2378 = vmatprep.mubr.bf16.mxu1 %v4181_v25  ;;  %3793 = vmatprep.mubr.bf16.mxu0 %v4182_v26 }
 0x16d   : > { %v3352_v52 = vpop.f32.mrf.mxu0  ;;  %v3440_v38 = vpop.f32.mrf.mxu1 }
 0x16e   : > { %v4761_v40 = vadd.f32 %v3352_v52, %v3351_v33  ;;  %v3441_v41 = vadd.f32 %v3440_v38, %v3439_v36 }
 0x16f   : > { %v3354_v42 = vpop.f32.mrf.mxu0  ;;  %v3442_v43 = vpop.f32.mrf.mxu1 }
 0x170   : > { %v4766_v48 = vadd.f32 %v3441_v41, %v4705_v9 }
 0x171   : > { %v3355_v55 = vpop.f32.mrf.mxu0  ;;  %v3443_v56 = vpop.f32.mrf.mxu1 }
 0x172   : > { %v4770_v1 = vadd.f32 %v3355_v55, %v3354_v42  ;;  %v3444_v57 = vadd.f32 %v3443_v56, %v3442_v43 }
 0x173   : > { %v3357_v59 = vpop.f32.mrf.mxu0  ;;  %v3445_v62 = vpop.f32.mrf.mxu1  ;;  %2379 = vmatmul.mubr.bf16.gmra.mxu1 %v4179_v46  ;;  %3794 = vmatmul.mubr.bf16.gmra.mxu0 %v4183_v47 }
 0x174   : > { %v4773_v0 = vadd.f32 %v3444_v57, %v4714_v60  ;;  %2386 = vmatprep.mubr.bf16.mxu1 %v4186_v18  ;;  %3797 = vmatprep.mubr.bf16.mxu0 %v4187_v53 }
 0x175   : > { %v3358_v9 = vpop.f32.mrf.mxu0  ;;  %v3446_v4 = vpop.f32.mrf.mxu1 }
 0x176   : > { %v4775_v5 = vadd.f32 %v3358_v9, %v3357_v59  ;;  %v3447_v6 = vadd.f32 %v3446_v4, %v3445_v62 }
 0x177   : > { %v3360_v50 = vpop.f32.mrf.mxu0  ;;  %v3448_v8 = vpop.f32.mrf.mxu1 }
 0x178   : > { %v4780_v14 = vadd.f32 %v3447_v6, %v4719_v31 }
 0x179   : > { %v3361_v16 = vpop.f32.mrf.mxu0  ;;  %v3449_v20 = vpop.f32.mrf.mxu1 }
 0x17a   : > { %v4782_v21 = vadd.f32 %v3361_v16, %v3360_v50  ;;  %v3450_v60 = vadd.f32 %v3449_v20, %v3448_v8 }
 0x17b   : > { %v3363_v22 = vpop.f32.mrf.mxu0  ;;  %v3451_v23 = vpop.f32.mrf.mxu1  ;;  %2387 = vmatmul.mubr.bf16.gmra.mxu1 %v4184_v10  ;;  %3798 = vmatmul.mubr.bf16.gmra.mxu0 %v4188_v34 }
 0x17c   : > { %v4785_v25 = vadd.f32 %v3450_v60, %v4728_v12 }
 0x17d   : > { %v3364_v26 = vpop.f32.mrf.mxu0  ;;  %v3452_v2 = vpop.f32.mrf.mxu1 }
 0x17e   : > { %v4787_v30 = vadd.f32 %v3364_v26, %v3363_v22  ;;  %v3453_v32 = vadd.f32 %v3452_v2, %v3451_v23 }
 0x17f   : > { %v3366_v33 = vpop.f32.mrf.mxu0  ;;  %v3454_v31 = vpop.f32.mrf.mxu1 }
 0x180   : > { %v4790_v36 = vadd.f32 %v3453_v32, %v4733_v54 }
 0x181   : > { %v3367_v52 = vpop.f32.mrf.mxu0  ;;  %v3455_v38 = vpop.f32.mrf.mxu1 }
 0x182   : > { %v4792_v41 = vadd.f32 %v3367_v52, %v3366_v33  ;;  %v3456_v42 = vadd.f32 %v3455_v38, %v3454_v31 }
 0x183   : > { %v3457_v43 = vpop.f32.mrf.mxu1  ;;  %v3521_v46 = vpop.f32.mrf.mxu0 }
 0x184   : > { %v4795_v12 = vadd.f32 %v3456_v42, %v4742_v28 }
 0x185   : > { %v3458_v47 = vpop.f32.mrf.mxu1  ;;  %v3522_v18 = vpop.f32.mrf.mxu0 }
 0x186   : > { %v3459_v53 = vadd.f32 %v3458_v47, %v3457_v43  ;;  %v3523_v55 = vadd.f32 %v3522_v18, %v3521_v46 }
 0x187   : > { %v3460_v56 = vpop.f32.mrf.mxu1  ;;  %v3524_v57 = vpop.f32.mrf.mxu0 }
 0x188   : > { %v4798_v59 = vadd.f32 %v3459_v53, %v4747_v15  ;;  %v4801_v54 = vadd.f32 %v3523_v55, %v4696_v58 }
 0x189   : > { %v3461_v62 = vpop.f32.mrf.mxu1  ;;  %v3525_v9 = vpop.f32.mrf.mxu0 }
 0x18a   : > { %v3462_v4 = vadd.f32 %v3461_v62, %v3460_v56  ;;  %v3526_v6 = vadd.f32 %v3525_v9, %v3524_v57 }
 0x18b   : > { %v3463_v50 = vpop.f32.mrf.mxu1  ;;  %v3527_v8 = vpop.f32.mrf.mxu0 }
 0x18c   : > { %v4804_v28 = vadd.f32 %v3462_v4, %v4756_v44  ;;  %v4807_v10 = vadd.f32 %v3526_v6, %v4703_v7 }
 0x18d   : > { %v3464_v34 = vpop.f32.mrf.mxu1  ;;  %v3528_v16 = vpop.f32.mrf.mxu0 }
 0x18e   : > { %v3465_v20 = vadd.f32 %v3464_v34, %v3463_v50  ;;  %v3529_v15 = vadd.f32 %v3528_v16, %v3527_v8 }
 0x18f   : > { %v3466_v60 = vpop.f32.mrf.mxu1  ;;  %v3530_v22 = vpop.f32.mrf.mxu0 }
 0x190   : > { %v4810_v58 = vadd.f32 %v3465_v20, %v4761_v40  ;;  %v4813_v23 = vadd.f32 %v3529_v15, %v4710_v17 }
 0x191   : > { %v3467_v26 = vpop.f32.mrf.mxu1  ;;  %v3531_v2 = vpop.f32.mrf.mxu0 }
 0x192   : > { %v3468_v32 = vadd.f32 %v3467_v26, %v3466_v60  ;;  %v3532_v44 = vadd.f32 %v3531_v2, %v3530_v22 }
 0x193   : > { %v3469_v33 = vpop.f32.mrf.mxu1  ;;  %v3533_v31 = vpop.f32.mrf.mxu0 }
 0x194   : > { %v4816_v7 = vadd.f32 %v3468_v32, %v4770_v1  ;;  %v4819_v52 = vadd.f32 %v3532_v44, %v4717_v27 }
 0x195   : > { %v3470_v38 = vpop.f32.mrf.mxu1  ;;  %v3534_v42 = vpop.f32.mrf.mxu0 }
 0x196   : > { %v3471_v43 = vadd.f32 %v3470_v38, %v3469_v33  ;;  %v3535_v40 = vadd.f32 %v3534_v42, %v3533_v31 }
 0x197   : > { %v3472_v46 = vpop.f32.mrf.mxu1  ;;  %v3536_v47 = vpop.f32.mrf.mxu0 }
 0x198   : > { %v4822_v17 = vadd.f32 %v3471_v43, %v4775_v5  ;;  %v4825_v18 = vadd.f32 %v3535_v40, %v4724_v39 }
 0x199   : > { %v3473_v53 = vpop.f32.mrf.mxu1  ;;  %v3537_v55 = vpop.f32.mrf.mxu0 }
 0x19a   : > { %v3474_v56 = vadd.f32 %v3473_v53, %v3472_v46  ;;  %v3538_v1 = vadd.f32 %v3537_v55, %v3536_v47 }
 0x19b   : > { %v3475_v57 = vpop.f32.mrf.mxu1  ;;  %v3539_v62 = vpop.f32.mrf.mxu0 }
 0x19c   : > { %v4828_v27 = vadd.f32 %v3474_v56, %v4782_v21  ;;  %v4831_v9 = vadd.f32 %v3538_v1, %v4731_v49 }
 0x19d   : > { %v3476_v4 = vpop.f32.mrf.mxu1  ;;  %v3540_v6 = vpop.f32.mrf.mxu0 }
 0x19e   : > { %v3477_v50 = vadd.f32 %v3476_v4, %v3475_v57  ;;  %v3541_v5 = vadd.f32 %v3540_v6, %v3539_v62 }
 0x19f   : > { %v3478_v8 = vpop.f32.mrf.mxu1  ;;  %v3542_v34 = vpop.f32.mrf.mxu0 }
 0x1a0   : > { %v4834_v39 = vadd.f32 %v3477_v50, %v4787_v30  ;;  %v4837_v16 = vadd.f32 %v3541_v5, %v4738_v63 }
 0x1a1   : > { %v3479_v20 = vpop.f32.mrf.mxu1  ;;  %v3543_v15 = vpop.f32.mrf.mxu0 }
 0x1a2   : > { %v3480_v60 = vadd.f32 %v3479_v20, %v3478_v8  ;;  %v3544_v21 = vadd.f32 %v3543_v15, %v3542_v34 }
 0x1a3   : > { %v3481_v22 = vpop.f32.mrf.mxu1  ;;  %v3545_v26 = vpop.f32.mrf.mxu0 }
 0x1a4   : > { %v4840_v49 = vadd.f32 %v3480_v60, %v4792_v41  ;;  %v4843_v2 = vadd.f32 %v3544_v21, %v4745_v11 }
 0x1a5   : > { %v3482_v32 = vpop.f32.mrf.mxu1  ;;  %v3546_v44 = vpop.f32.mrf.mxu0 }
 0x1a6   : > { %v3483_v33 = vadd.f32 %v3482_v32, %v3481_v22  ;;  %v3547_v30 = vadd.f32 %v3546_v44, %v3545_v26 }
 0x1a7   : > { %v3484_v31 = vpop.f32.mrf.mxu1  ;;  %v3548_v38 = vpop.f32.mrf.mxu0 }
 0x1a8   : > { %v4846_v63 = vadd.f32 %v3483_v33, %v4645_v51  ;;  %v4849_v42 = vadd.f32 %v3547_v30, %v4752_v24 }
 0x1a9   : > { %v3485_v43 = vpop.f32.mrf.mxu1  ;;  %v3549_v40 = vpop.f32.mrf.mxu0 }
 0x1aa   : > { %v3486_v46 = vadd.f32 %v3485_v43, %v3484_v31  ;;  %v3550_v41 = vadd.f32 %v3549_v40, %v3548_v38 }
 0x1ab   : > { %v3487_v47 = vpop.f32.mrf.mxu1  ;;  %v3551_v53 = vpop.f32.mrf.mxu0 }
 0x1ac   : > { %v4852_v11 = vadd.f32 %v3486_v46, %v4653_v61  ;;  %v4855_v55 = vadd.f32 %v3550_v41, %v4759_v37 }
 0x1ad   : > { %v3488_v56 = vpop.f32.mrf.mxu1  ;;  %v3552_v1 = vpop.f32.mrf.mxu0 }
 0x1ae   : > { %v3489_v57 = vadd.f32 %v3488_v56, %v3487_v47  ;;  %v3553_v51 = vadd.f32 %v3552_v1, %v3551_v53 }
 0x1af   : > { %v3490_v62 = vpop.f32.mrf.mxu1  ;;  %v3554_v4 = vpop.f32.mrf.mxu0 }
 0x1b0   : > { %v4858_v24 = vadd.f32 %v3489_v57, %v4657_v3  ;;  %v4861_v6 = vadd.f32 %v3553_v51, %v4766_v48 }
 0x1b1   : > { %v3491_v50 = vpop.f32.mrf.mxu1  ;;  %v3555_v5 = vpop.f32.mrf.mxu0 }
 0x1b2   : > { %v3492_v8 = vadd.f32 %v3491_v50, %v3490_v62  ;;  %v3556_v61 = vadd.f32 %v3555_v5, %v3554_v4 }
 0x1b3   : > { %v3493_v34 = vpop.f32.mrf.mxu1  ;;  %v3557_v20 = vpop.f32.mrf.mxu0 }
 0x1b4   : > { %v4864_v37 = vadd.f32 %v3492_v8, %v4665_v13  ;;  %v4867_v15 = vadd.f32 %v3556_v61, %v4773_v0 }
 0x1b5   : > { %v3494_v60 = vpop.f32.mrf.mxu1  ;;  %v3558_v21 = vpop.f32.mrf.mxu0 }
 0x1b6   : > { %v3495_v22 = vadd.f32 %v3494_v60, %v3493_v34  ;;  %v3559_v3 = vadd.f32 %v3558_v21, %v3557_v20 }
 0x1b7   : > { %v3496_v26 = vpop.f32.mrf.mxu1  ;;  %v3560_v32 = vpop.f32.mrf.mxu0 }
 0x1b8   : > { %v4870_v48 = vadd.f32 %v3495_v22, %v4669_v19  ;;  %v4873_v44 = vadd.f32 %v3559_v3, %v4780_v14 }
 0x1b9   : > { %v3497_v33 = vpop.f32.mrf.mxu1  ;;  %v3561_v30 = vpop.f32.mrf.mxu0 }
 0x1ba   : > { %v3498_v31 = vadd.f32 %v3497_v33, %v3496_v26  ;;  %v3562_v13 = vadd.f32 %v3561_v30, %v3560_v32 }
 0x1bb   : > { %v3499_v38 = vpop.f32.mrf.mxu1  ;;  %v3563_v43 = vpop.f32.mrf.mxu0 }
 0x1bc   : > { %v4876_v0 = vadd.f32 %v3498_v31, %v4677_v29  ;;  %v4879_v40 = vadd.f32 %v3562_v13, %v4785_v25 }
 0x1bd   : > { %v3500_v46 = vpop.f32.mrf.mxu1  ;;  %v3564_v41 = vpop.f32.mrf.mxu0 }
 0x1be   : > { %v3501_v47 = vadd.f32 %v3500_v46, %v3499_v38  ;;  %v3565_v19 = vadd.f32 %v3564_v41, %v3563_v43 }
 0x1bf   : > { %v3502_v53 = vpop.f32.mrf.mxu1  ;;  %v3566_v56 = vpop.f32.mrf.mxu0 }
 0x1c0   : > { %v4882_v14 = vadd.f32 %v3501_v47, %v4681_v35  ;;  %v4885_v1 = vadd.f32 %v3565_v19, %v4790_v36 }
 0x1c1   : > { %v3503_v57 = vpop.f32.mrf.mxu1  ;;  %v3567_v51 = vpop.f32.mrf.mxu0 }
 0x1c2   : > { %v3504_v62 = vadd.f32 %v3503_v57, %v3502_v53  ;;  %v3568_v29 = vadd.f32 %v3567_v51, %v3566_v56 }
 0x1c3   : > { %v3569_v4 = vpop.f32.mrf.mxu0  ;;  %v4887_v50 = vpop.f32.mrf.mxu1 }
 0x1c4   : > { %v4890_v25 = vadd.f32 %v3504_v62, %v4689_v45  ;;  %v4893_v5 = vadd.f32 %v3568_v29, %v4795_v12 }
 0x1c5   : > { %v3570_v8 = vpop.f32.mrf.mxu0  ;;  %v4895_v61 = vpop.f32.mrf.mxu1 }
 0x1c6   : > { %v3571_v35 = vadd.f32 %v3570_v8, %v3569_v4 }
 0x1c7   : > { %v3572_v34 = vpop.f32.mrf.mxu0  ;;  %v4897_v36 = vpop.f32.mrf.mxu1 }
 0x1c8   : > { %v4900_v20 = vadd.f32 %v3571_v35, %v4798_v59 }
 0x1c9   : > { %v3573_v60 = vpop.f32.mrf.mxu0  ;;  %v4902_v21 = vpop.f32.mrf.mxu1 }
 0x1ca   : > { %v3574_v22 = vadd.f32 %v3573_v60, %v3572_v34 }
 0x1cb   : > { %v3575_v3 = vpop.f32.mrf.mxu0  ;;  %v4904_v45 = vpop.f32.mrf.mxu1 }
 0x1cc   : > { %v4907_v12 = vadd.f32 %v3574_v22, %v4804_v28 }
 0x1cd   : > { %v3576_v26 = vpop.f32.mrf.mxu0  ;;  %v4909_v32 = vpop.f32.mrf.mxu1 }
 0x1ce   : > { %5273 = vst [vmem:[#allocation15_spill] sm:$0xff] %v4907_v12  ;;  %v3577_v33 = vadd.f32 %v3576_v26, %v3575_v3 }
 0x1cf   : > { %v3578_v30 = vpop.f32.mrf.mxu0  ;;  %v4911_v31 = vpop.f32.mrf.mxu1 }
 0x1d0   : > { %v4914_v59 = vadd.f32 %v3577_v33, %v4810_v58 }
 0x1d1   : > { %v3579_v13 = vpop.f32.mrf.mxu0  ;;  %v4916_v38 = vpop.f32.mrf.mxu1 }
 0x1d2   : > { %v3580_v43 = vadd.f32 %v3579_v13, %v3578_v30 }
 0x1d3   : > { %v3581_v46 = vpop.f32.mrf.mxu0  ;;  %v4918_v41 = vpop.f32.mrf.mxu1 }
 0x1d4   : > { %v4921_v28 = vadd.f32 %v3580_v43, %v4816_v7 }
 0x1d5   : > { %v3582_v47 = vpop.f32.mrf.mxu0  ;;  %v4923_v19 = vpop.f32.mrf.mxu1 }
 0x1d6   : > { %v3583_v53 = vadd.f32 %v3582_v47, %v3581_v46 }
 0x1d7   : > { %v3584_v56 = vpop.f32.mrf.mxu0  ;;  %v4925_v57 = vpop.f32.mrf.mxu1 }
 0x1d8   : > { %v4928_v58 = vadd.f32 %v3583_v53, %v4822_v17 }
 0x1d9   : > { %v3585_v51 = vpop.f32.mrf.mxu0  ;;  %v4930_v62 = vpop.f32.mrf.mxu1 }
 0x1da   : > { %5274 = vst [vmem:[#allocation16_spill] sm:$0xff] %v4928_v58  ;;  %v3586_v29 = vadd.f32 %v3585_v51, %v3584_v56 }
 0x1db   : > { %v3587_v4 = vpop.f32.mrf.mxu0  ;;  %v4932_v8 = vpop.f32.mrf.mxu1 }
 0x1dc   : > { %v4935_v7 = vadd.f32 %v3586_v29, %v4828_v27 }
 0x1dd   : > { %v3588_v35 = vpop.f32.mrf.mxu0  ;;  %v4937_v34 = vpop.f32.mrf.mxu1 }
 0x1de   : > { %5275 = vst [vmem:[#allocation17_spill] sm:$0xff] %v4935_v7  ;;  %v3589_v60 = vadd.f32 %v3588_v35, %v3587_v4 }
 0x1df   : > { %v3590_v22 = vpop.f32.mrf.mxu0  ;;  %v4939_v3 = vpop.f32.mrf.mxu1 }
 0x1e0   : > { %v4942_v17 = vadd.f32 %v3589_v60, %v4834_v39 }
 0x1e1   : > { %v3591_v26 = vpop.f32.mrf.mxu0  ;;  %v4944_v33 = vpop.f32.mrf.mxu1 }
 0x1e2   : > { %5276 = vst [vmem:[#allocation18_spill] sm:$0xff] %v4942_v17  ;;  %v3592_v30 = vadd.f32 %v3591_v26, %v3590_v22 }
 0x1e3   : > { %v3593_v13 = vpop.f32.mrf.mxu0  ;;  %v4946_v43 = vpop.f32.mrf.mxu1 }
 0x1e4   : > { %v4949_v27 = vadd.f32 %v3592_v30, %v4840_v49 }
 0x1e5   : > { %v3594_v46 = vpop.f32.mrf.mxu0  ;;  %v4951_v47 = vpop.f32.mrf.mxu1 }
 0x1e6   : > { %5277 = vst [vmem:[#allocation19_spill] sm:$0xff] %v4949_v27  ;;  %v3595_v53 = vadd.f32 %v3594_v46, %v3593_v13 }
 0x1e7   : > { %v3596_v56 = vpop.f32.mrf.mxu0  ;;  %v4953_v51 = vpop.f32.mrf.mxu1 }
 0x1e8   : > { %v4956_v39 = vadd.f32 %v3595_v53, %v4846_v63 }
 0x1e9   : > { %v3597_v29 = vpop.f32.mrf.mxu0  ;;  %v4958_v4 = vpop.f32.mrf.mxu1 }
 0x1ea   : > { %5278 = vst [vmem:[#allocation20_spill] sm:$0xff] %v4956_v39  ;;  %v3598_v35 = vadd.f32 %v3597_v29, %v3596_v56 }
 0x1eb   : > { %v3599_v60 = vpop.f32.mrf.mxu0  ;;  %v4960_v22 = vpop.f32.mrf.mxu1 }
 0x1ec   : > { %v4963_v49 = vadd.f32 %v3598_v35, %v4852_v11 }
 0x1ed   : > { %v3600_v26 = vpop.f32.mrf.mxu0  ;;  %v4965_v30 = vpop.f32.mrf.mxu1 }
 0x1ee   : > { %5279 = vst [vmem:[#allocation21_spill] sm:$0xff] %v4963_v49  ;;  %v3601_v13 = vadd.f32 %v3600_v26, %v3599_v60 }
 0x1ef   : > { %v3602_v46 = vpop.f32.mrf.mxu0  ;;  %v4967_v7 = vpop.f32.mrf.mxu1 }
 0x1f0   : > { %v4970_v63 = vadd.f32 %v3601_v13, %v4858_v24 }
 0x1f1   : > { %v3603_v53 = vpop.f32.mrf.mxu0  ;;  %v4972_v39 = vpop.f32.mrf.mxu1 }
 0x1f2   : > { %5280 = vst [vmem:[#allocation22_spill] sm:$0xff] %v4970_v63  ;;  %v3604_v56 = vadd.f32 %v3603_v53, %v3602_v46 }
 0x1f3   : > { %v3605_v29 = vpop.f32.mrf.mxu0  ;;  %v4974_v27 = vpop.f32.mrf.mxu1 }
 0x1f4   : > { %v4977_v11 = vadd.f32 %v3604_v56, %v4864_v37 }
 0x1f5   : > { %v3606_v35 = vpop.f32.mrf.mxu0  ;;  %v4979_v49 = vpop.f32.mrf.mxu1 }
 0x1f6   : > { %5281 = vst [vmem:[#allocation23_spill] sm:$0xff] %v4977_v11  ;;  %v3607_v60 = vadd.f32 %v3606_v35, %v3605_v29  ;;  %v3641_v29 = vadd.f32 %v4909_v32, %v4904_v45 }
 0x1f7   : > { %v3608_v26 = vpop.f32.mrf.mxu0  ;;  %v4981_v58 = vpop.f32.mrf.mxu1 }
 0x1f8   : > { %v4984_v24 = vadd.f32 %v3607_v60, %v4870_v48  ;;  %v3635_v60 = vadd.f32 %v4895_v61, %v4887_v50  ;;  %v2277_v45 = vadd.f32 %v3641_v29, %v4813_v23 }
 0x1f9   : > { %v3609_v13 = vpop.f32.mrf.mxu0  ;;  %v4986_v63 = vpop.f32.mrf.mxu1 }
 0x1fa   : > { %v3610_v46 = vadd.f32 %v3609_v13, %v3608_v26  ;;  %v2269_v61 = vadd.f32 %v3635_v60, %v4801_v54 }
 0x1fb   : > { %v3611_v53 = vpop.f32.mrf.mxu0  ;;  %v4988_v17 = vpop.f32.mrf.mxu1 }
 0x1fc   : > { %v4991_v37 = vadd.f32 %v3610_v46, %v4876_v0  ;;  %v3644_v46 = vadd.f32 %v4916_v38, %v4911_v31  ;;  %v3647_v38 = vadd.f32 %v4923_v19, %v4918_v41  ;;  %v3650_v41 = vadd.f32 %v4930_v62, %v4925_v57 }
 0x1fd   : > { %v3612_v56 = vpop.f32.mrf.mxu0  ;;  %v4993_v11 = vpop.f32.mrf.mxu1  ;;  %v3665_v19 = vadd.f32 %v4965_v30, %v4960_v22 }
 0x1fe   : > { %5282 = vst [vmem:[#allocation24_spill] sm:$0xff] %v4991_v37  ;;  %v3613_v35 = vadd.f32 %v3612_v56, %v3611_v53  ;;  %v3638_v56 = vadd.f32 %v4902_v21, %v4897_v36  ;;  %v2280_v36 = vadd.f32 %v3644_v46, %v4819_v52 }
 0x1ff   : > { %v3614_v12 = vpop.f32.mrf.mxu0  ;;  %v4997_v48 = vpop.f32.mrf.mxu1 }
 0x200   : > { %v5002_v26 = vadd.f32 %v3613_v35, %v4882_v14  ;;  %v2272_v31 = vadd.f32 %v3638_v56, %v4807_v10 }
 0x201   : > { %v3615_v13 = vpop.f32.mrf.mxu0  ;;  %v5005_v0 = vpop.f32.mrf.mxu1 }
 0x202   : > { %5283 = vst [vmem:[#allocation25_spill] sm:$0xff] %v5002_v26  ;;  %v3616_v37 = vadd.f32 %v3615_v13, %v3614_v12  ;;  %v3653_v12 = vadd.f32 %v4937_v34, %v4932_v8 }
 0x203   : > { %v5010_v32 = vpop.f32.mrf.mxu1  ;;  %v3771_v53 = vpop.f32.mrf.mxu0 }
 0x204   : > { %v5015_v50 = vadd.f32 %v3616_v37, %v4890_v25  ;;  %v2438_v14 = vadd.f32 %v3771_v53, %v2277_v45  ;;  %v3656_v37 = vadd.f32 %v4944_v33, %v4939_v3  ;;  %v2293_v52 = vadd.f32 %v3653_v12, %v4837_v16 }
 0x205   : > { %v5018_v35 = vpop.f32.mrf.mxu1  ;;  %v2429_v26 = vpop.f32.mrf.mxu0  ;;  %v2285_v16 = vadd.f32 %v3647_v38, %v4825_v18 }
 0x206   : > { %2562 = vst [vmem:[%s5022_s25 + $0x10] sm:$0xff] %v2438_v14  ;;  %v2430_v23 = vadd.f32 %v2429_v26, %v2269_v61  ;;  %v2766_v53 = vmul.f32 %v2438_v14, %v2438_v14  ;;  %v2296_v12 = vadd.f32 %v3656_v37, %v4843_v2  ;;  %v2309_v2 = vadd.f32 %v3665_v19, %v4861_v6 }
 0x207   : > { %v5026_v25 = vpop.f32.mrf.mxu1  ;;  %v3772_v21 = vpop.f32.mrf.mxu0 }
 0x208   : > { %2560 = vst [vmem:[%s5022_s25] sm:$0xff] %v2430_v23  ;;  %v2441_v54 = vadd.f32 %v3772_v21, %v2280_v36  ;;  %v2764_v13 = vmul.f32 %v2430_v23, %v2430_v23 }
 0x209   : > { %v5032_v8 = vpop.f32.mrf.mxu1  ;;  %v2432_v34 = vpop.f32.mrf.mxu0 }
 0x20a   : > { %2563 = vst [vmem:[%s5022_s25 + $0x18] sm:$0xff] %v2441_v54  ;;  %v2433_v29 = vadd.f32 %v2432_v34, %v2272_v31  ;;  %v2767_v22 = vmul.f32 %v2441_v54, %v2441_v54 }
 0x20b   : > { %v5038_v60 = vpop.f32.mrf.mxu1  ;;  %v3775_v26 = vpop.f32.mrf.mxu0 }
 0x20c   : > { %2561 = vst [vmem:[%s5022_s25 + $0x8] sm:$0xff] %v2433_v29  ;;  %v2727_v10 = vadd.f32 %v2433_v29, %v2430_v23  ;;  %v2765_v46 = vmul.f32 %v2433_v29, %v2433_v29  ;;  %v2454_v45 = vadd.f32 %v3775_v26, %v2293_v52  ;;  %v3659_v23 = vadd.f32 %v4951_v47, %v4946_v43 }
 0x20d   : > { %v5045_v3 = vpop.f32.mrf.mxu1  ;;  %v2445_v33 = vpop.f32.mrf.mxu0  ;;  %v3668_v43 = vadd.f32 %v4972_v39, %v4967_v7  ;;  %v3662_v26 = vadd.f32 %v4958_v4, %v4953_v51 }
 0x20e   : > { %v2728_v56 = vadd.f32 %v2727_v10, %v2438_v14  ;;  %v2796_v61 = vadd.f32 %v2765_v46, %v2764_v13  ;;  %2566 = vst [vmem:[%s5022_s25 + $0x30] sm:$0xff] %v2454_v45  ;;  %v2446_v36 = vadd.f32 %v2445_v33, %v2285_v16  ;;  %v2288_v14 = vadd.f32 %v3650_v41, %v4831_v9 }
 0x20f   : > { %v5052_v57 = vpop.f32.mrf.mxu1  ;;  %v3776_v62 = vpop.f32.mrf.mxu0  ;;  %v2301_v10 = vadd.f32 %v3659_v23, %v4849_v42  ;;  %v3677_v41 = vadd.f32 %v4993_v11, %v4988_v17  ;;  %v2312_v16 = vadd.f32 %v3668_v43, %v4867_v15  ;;  %v2770_v51 = vmul.f32 %v2454_v45, %v2454_v45 }
 0x210   : > { %v2797_v30 = vadd.f32 %v2796_v61, %v2766_v53  ;;  %v2729_v21 = vadd.f32 %v2728_v56, %v2441_v54  ;;  %v2457_v31 = vadd.f32 %v3776_v62, %v2296_v12  ;;  %2564 = vst [vmem:[%s5022_s25 + $0x20] sm:$0xff] %v2446_v36  ;;  %v2768_v34 = vmul.f32 %v2446_v36, %v2446_v36 }
 0x211   : > { %v5055_v18 = vpop.f32.mrf.mxu1  ;;  %v2448_v38 = vpop.f32.mrf.mxu0  ;;  %v3671_v56 = vadd.f32 %v4979_v49, %v4974_v27  ;;  %v2304_v12 = vadd.f32 %v3662_v26, %v4855_v55 }
 0x212   : > { %v2730_v47 = vadd.f32 %v2729_v21, %v2446_v36  ;;  %v2798_v37 = vadd.f32 %v2797_v30, %v2767_v22  ;;  %2567 = vst [vmem:[%s5022_s25 + $0x38] sm:$0xff] %v2457_v31  ;;  %v2449_v29 = vadd.f32 %v2448_v38, %v2288_v14  ;;  %v2771_v17 = vmul.f32 %v2457_v31, %v2457_v31 }
 0x213   : > { %v5062_v54 = vpop.f32.mrf.mxu1  ;;  %v3779_v52 = vpop.f32.mrf.mxu0  ;;  %v2325_v22 = vadd.f32 %v3677_v41, %v4885_v1  ;;  %v3674_v14 = vadd.f32 %v4986_v63, %v4981_v58  ;;  %v3689_v1 = vadd.f32 %v5045_v3, %v5038_v60 }
 0x214   : > { %v2799_v13 = vadd.f32 %v2798_v37, %v2768_v34  ;;  %v2470_v9 = vadd.f32 %v3779_v52, %v2309_v2  ;;  %2565 = vst [vmem:[%s5022_s25 + $0x28] sm:$0xff] %v2449_v29  ;;  %v2731_v6 = vadd.f32 %v2730_v47, %v2449_v29  ;;  %v2769_v7 = vmul.f32 %v2449_v29, %v2449_v29 }
 0x215   : > { %v5068_v39 = vpop.f32.mrf.mxu1  ;;  %v2461_v46 = vpop.f32.mrf.mxu0  ;;  %v2317_v2 = vadd.f32 %v3671_v56, %v4873_v44  ;;  %v3683_v44 = vadd.f32 %v5018_v35, %v5010_v32  ;;  %v2341_v41 = vadd.f32 %v3689_v1, %v4914_v59 }
 0x216   : > { %2570 = vst [vmem:[%s5022_s25 + $0x50] sm:$0xff] %v2470_v9  ;;  %v2462_v19 = vadd.f32 %v2461_v46, %v2301_v10  ;;  %v2732_v4 = vadd.f32 %v2731_v6, %v2454_v45  ;;  %v2800_v33 = vadd.f32 %v2799_v13, %v2769_v7  ;;  %v3680_v45 = vadd.f32 %v5005_v0, %v4997_v48 }
 0x217   : > { %v5074_v53 = vpop.f32.mrf.mxu1  ;;  %v3780_v42 = vpop.f32.mrf.mxu0  ;;  %v2774_v29 = vmul.f32 %v2470_v9, %v2470_v9  ;;  %v2320_v10 = vadd.f32 %v3674_v14, %v4879_v40  ;;  %v3686_v40 = vadd.f32 %v5032_v8, %v5026_v25 }
 0x218   : > { %2568 = vst [vmem:[%s5022_s25 + $0x40] sm:$0xff] %v2462_v19  ;;  %v2473_v61 = vadd.f32 %v3780_v42, %v2312_v16  ;;  %v2801_v11 = vadd.f32 %v2800_v33, %v2770_v51  ;;  %v2733_v23 = vadd.f32 %v2732_v4, %v2457_v31  ;;  %v2772_v49 = vmul.f32 %v2462_v19, %v2462_v19 }
 0x219   : > { %v5080_v36 = vpop.f32.mrf.mxu1  ;;  %v2464_v15 = vpop.f32.mrf.mxu0  ;;  %v2328_v37 = vadd.f32 %v3680_v45, %v4893_v5  ;;  %v3692_v5 = vadd.f32 %v5055_v18, %v5052_v57  ;;  %v2333_v42 = vadd.f32 %v3683_v44, %v4900_v20  ;;  %v3695_v45 = vadd.f32 %v5068_v39, %v5062_v54 }
 0x21a   : > { %2571 = vst [vmem:[%s5022_s25 + $0x58] sm:$0xff] %v2473_v61  ;;  %v2465_v62 = vadd.f32 %v2464_v15, %v2304_v12  ;;  %v2734_v27 = vadd.f32 %v2733_v23, %v2462_v19  ;;  %v2802_v30 = vadd.f32 %v2801_v11, %v2771_v17  ;;  %v2775_v6 = vmul.f32 %v2473_v61, %v2473_v61 }
 0x21b   : > { %v3699_v21 = vpop.f32.mrf.mxu1  ;;  %v3783_v55 = vpop.f32.mrf.mxu0  ;;  %v2344_v17 = vadd.f32 %v3692_v5, %v4921_v28  ;;  %v5288_v5 = vld [vmem:[#allocation17_spill] sm:$0xff] }
 0x21c   : > { %2569 = vst [vmem:[%s5022_s25 + $0x48] sm:$0xff] %v2465_v62  ;;  %v2773_v31 = vmul.f32 %v2465_v62, %v2465_v62  ;;  %v2486_v38 = vadd.f32 %v3783_v55, %v2325_v22  ;;  %v2803_v48 = vadd.f32 %v2802_v30, %v2772_v49  ;;  %v2735_v0 = vadd.f32 %v2734_v27, %v2465_v62  ;;  %v5284_v62 = vld [vmem:[#allocation15_spill] sm:$0xff] }
 0x21d   : > { %v3700_v43 = vpop.f32.mrf.mxu1  ;;  %v2477_v47 = vpop.f32.mrf.mxu0  ;;  %v2336_v22 = vadd.f32 %v3686_v40, %v5284_v62 }
 0x21e   : > { %2574 = vst [vmem:[%s5022_s25 + $0x70] sm:$0xff] %v2486_v38  ;;  %v2478_v34 = vadd.f32 %v2477_v47, %v2317_v2  ;;  %v2736_v58 = vadd.f32 %v2735_v0, %v2470_v9  ;;  %v2804_v63 = vadd.f32 %v2803_v48, %v2773_v31  ;;  %v3701_v59 = vadd.f32 %v3700_v43, %v3699_v21  ;;  %v5285_v31 = vld [vmem:[#allocation18_spill] sm:$0xff] }
 0x21f   : > { %v3702_v52 = vpop.f32.mrf.mxu1  ;;  %v3784_v26 = vpop.f32.mrf.mxu0  ;;  %v2778_v11 = vmul.f32 %v2486_v38, %v2486_v38  ;;  %v3698_v43 = vadd.f32 %v5080_v36, %v5074_v53 }
 0x220   : > { %2572 = vst [vmem:[%s5022_s25 + $0x60] sm:$0xff] %v2478_v34  ;;  %v2489_v13 = vadd.f32 %v3784_v26, %v2328_v37  ;;  %v2805_v60 = vadd.f32 %v2804_v63, %v2774_v29  ;;  %v2737_v3 = vadd.f32 %v2736_v58, %v2473_v61  ;;  %v2776_v32 = vmul.f32 %v2478_v34, %v2478_v34 }
 0x221   : > { %v3703_v7 = vpop.f32.mrf.mxu1  ;;  %v2480_v46 = vpop.f32.mrf.mxu0 }
 0x222   : > { %2575 = vst [vmem:[%s5022_s25 + $0x78] sm:$0xff] %v2489_v13  ;;  %v2481_v9 = vadd.f32 %v2480_v46, %v2320_v10  ;;  %v2738_v19 = vadd.f32 %v2737_v3, %v2478_v34  ;;  %v2806_v35 = vadd.f32 %v2805_v60, %v2775_v6  ;;  %v2779_v27 = vmul.f32 %v2489_v13, %v2489_v13  ;;  %v5286_v34 = vld [vmem:[#allocation16_spill] sm:$0xff] }
 0x223   : > { %v3705_v16 = vpop.f32.mrf.mxu1  ;;  %v3787_v51 = vpop.f32.mrf.mxu0  ;;  %v3704_v28 = vadd.f32 %v3703_v7, %v3702_v52  ;;  %v2349_v37 = vadd.f32 %v3695_v45, %v5286_v34 }
 0x224   : > { %2573 = vst [vmem:[%s5022_s25 + $0x68] sm:$0xff] %v2481_v9  ;;  %v2777_v4 = vmul.f32 %v2481_v9, %v2481_v9  ;;  %v2502_v33 = vadd.f32 %v3787_v51, %v2341_v41  ;;  %v2807_v57 = vadd.f32 %v2806_v35, %v2776_v32  ;;  %v2739_v18 = vadd.f32 %v2738_v19, %v2481_v9 }
 0x225   : > { %v3706_v56 = vpop.f32.mrf.mxu1  ;;  %v2493_v61 = vpop.f32.mrf.mxu0  ;;  %v2352_v9 = vadd.f32 %v3698_v43, %v5288_v5  ;;  %v5293_v5 = vld [vmem:[#allocation25_spill] sm:$0xff] }
 0x226   : > { %2578 = vst [vmem:[%s5022_s25 + $0x90] sm:$0xff] %v2502_v33  ;;  %v2494_v12 = vadd.f32 %v2493_v61, %v2333_v42  ;;  %v2740_v23 = vadd.f32 %v2739_v18, %v2486_v38  ;;  %v2808_v15 = vadd.f32 %v2807_v57, %v2777_v4  ;;  %v2357_v38 = vadd.f32 %v3701_v59, %v5285_v31  ;;  %v5289_v42 = vld [vmem:[#allocation22_spill] sm:$0xff]  ;;  %v5292_v31 = vld [vmem:[#allocation21_spill] sm:$0xff] }
 0x227   : > { %v3708_v25 = vpop.f32.mrf.mxu1  ;;  %v3788_v8 = vpop.f32.mrf.mxu0  ;;  %v2782_v6 = vmul.f32 %v2502_v33, %v2502_v33  ;;  %v3707_v7 = vadd.f32 %v3706_v56, %v3705_v16 }
 0x228   : > { %2576 = vst [vmem:[%s5022_s25 + $0x80] sm:$0xff] %v2494_v12  ;;  %v2505_v20 = vadd.f32 %v3788_v8, %v2344_v17  ;;  %v2809_v49 = vadd.f32 %v2808_v15, %v2778_v11  ;;  %v2741_v30 = vadd.f32 %v2740_v23, %v2489_v13  ;;  %v2780_v48 = vmul.f32 %v2494_v12, %v2494_v12  ;;  %v5287_v13 = vld [vmem:[#allocation19_spill] sm:$0xff]  ;;  %v5290_v11 = vld [vmem:[#allocation20_spill] sm:$0xff] }
 0x229   : > { %v3709_v21 = vpop.f32.mrf.mxu1  ;;  %v2496_v55 = vpop.f32.mrf.mxu0  ;;  %v2360_v10 = vadd.f32 %v3704_v28, %v5287_v13  ;;  %v2365_v23 = vadd.f32 %v3707_v7, %v5290_v11 }
 0x22a   : > { %2579 = vst [vmem:[%s5022_s25 + $0x98] sm:$0xff] %v2505_v20  ;;  %v2497_v14 = vadd.f32 %v2496_v55, %v2336_v22  ;;  %v2742_v2 = vadd.f32 %v2741_v30, %v2494_v12  ;;  %v2810_v0 = vadd.f32 %v2809_v49, %v2779_v27  ;;  %v2783_v41 = vmul.f32 %v2505_v20, %v2505_v20  ;;  %v5291_v22 = vld [vmem:[#allocation23_spill] sm:$0xff] }
 0x22b   : > { %v3711_v54 = vpop.f32.mrf.mxu1  ;;  %v3791_v39 = vpop.f32.mrf.mxu0  ;;  %v3710_v59 = vadd.f32 %v3709_v21, %v3708_v25 }
 0x22c   : > { %2577 = vst [vmem:[%s5022_s25 + $0x88] sm:$0xff] %v2497_v14  ;;  %v2781_v47 = vmul.f32 %v2497_v14, %v2497_v14  ;;  %v2518_v1 = vadd.f32 %v3791_v39, %v2357_v38  ;;  %v2811_v29 = vadd.f32 %v2810_v0, %v2780_v48  ;;  %v2743_v58 = vadd.f32 %v2742_v2, %v2497_v14 }
 0x22d   : > { %v3712_v63 = vpop.f32.mrf.mxu1  ;;  %v2509_v52 = vpop.f32.mrf.mxu0  ;;  %v2368_v38 = vadd.f32 %v3710_v59, %v5292_v31 }
 0x22e   : > { %2582 = vst [vmem:[%s5022_s25 + $0xb0] sm:$0xff] %v2518_v1  ;;  %v3713_v26 = vadd.f32 %v3712_v63, %v3711_v54  ;;  %v2510_v44 = vadd.f32 %v2509_v52, %v2349_v37  ;;  %v2744_v60 = vadd.f32 %v2743_v58, %v2502_v33  ;;  %v2812_v3 = vadd.f32 %v2811_v29, %v2781_v47 }
 0x22f   : > { %v3714_v53 = vpop.f32.mrf.mxu1  ;;  %v3792_v36 = vpop.f32.mrf.mxu0  ;;  %v2786_v28 = vmul.f32 %v2518_v1, %v2518_v1 }
 0x230   : > { %2580 = vst [vmem:[%s5022_s25 + $0xa0] sm:$0xff] %v2510_v44  ;;  %v2521_v46 = vadd.f32 %v3792_v36, %v2360_v10  ;;  %v2813_v19 = vadd.f32 %v2812_v3, %v2782_v6  ;;  %v2745_v32 = vadd.f32 %v2744_v60, %v2505_v20  ;;  %v2373_v33 = vadd.f32 %v3713_v26, %v5289_v42 }
 0x231   : > { %v3715_v35 = vpop.f32.mrf.mxu1  ;;  %v2512_v51 = vpop.f32.mrf.mxu0  ;;  %v2784_v18 = vmul.f32 %v2510_v44, %v2510_v44 }
 0x232   : > { %2583 = vst [vmem:[%s5022_s25 + $0xb8] sm:$0xff] %v2521_v46  ;;  %v3716_v40 = vadd.f32 %v3715_v35, %v3714_v53  ;;  %v2513_v4 = vadd.f32 %v2512_v51, %v2352_v9  ;;  %v2746_v57 = vadd.f32 %v2745_v32, %v2510_v44  ;;  %v2814_v61 = vadd.f32 %v2813_v19, %v2783_v41  ;;  %v5294_v41 = vld [vmem:[#allocation24_spill] sm:$0xff] }
 0x233   : > { %v3717_v16 = vpop.f32.mrf.mxu1  ;;  %v3795_v56 = vpop.f32.mrf.mxu0  ;;  %v2787_v54 = vmul.f32 %v2521_v46, %v2521_v46 }
 0x234   : > { %2581 = vst [vmem:[%s5022_s25 + $0xa8] sm:$0xff] %v2513_v4  ;;  %v2785_v12 = vmul.f32 %v2513_v4, %v2513_v4  ;;  %v2534_v17 = vadd.f32 %v3795_v56, %v2373_v33  ;;  %v2815_v15 = vadd.f32 %v2814_v61, %v2784_v18  ;;  %v2747_v20 = vadd.f32 %v2746_v57, %v2513_v4 }
 0x235   : > { %v3718_v8 = vpop.f32.mrf.mxu1  ;;  %v2525_v45 = vpop.f32.mrf.mxu0  ;;  %v2376_v27 = vadd.f32 %v3716_v40, %v5291_v22 }
 0x236   : > { %2586 = vst [vmem:[%s5022_s25 + $0xd0] sm:$0xff] %v2534_v17  ;;  %v2526_v62 = vadd.f32 %v2525_v45, %v2365_v23  ;;  %v2748_v55 = vadd.f32 %v2747_v20, %v2518_v1  ;;  %v2816_v25 = vadd.f32 %v2815_v15, %v2785_v12  ;;  %v3719_v21 = vadd.f32 %v3718_v8, %v3717_v16 }
 0x237   : > { %v3720_v49 = vpop.f32.mrf.mxu1  ;;  %v3796_v30 = vpop.f32.mrf.mxu0  ;;  %v2790_v7 = vmul.f32 %v2534_v17, %v2534_v17 }
 0x238   : > { %2584 = vst [vmem:[%s5022_s25 + $0xc0] sm:$0xff] %v2526_v62  ;;  %v2537_v14 = vadd.f32 %v3796_v30, %v2376_v27  ;;  %v2749_v0 = vadd.f32 %v2748_v55, %v2521_v46  ;;  %v2817_v39 = vadd.f32 %v2816_v25, %v2786_v28  ;;  %v2788_v29 = vmul.f32 %v2526_v62, %v2526_v62 }
 0x239   : > { %v3721_v2 = vpop.f32.mrf.mxu1  ;;  %v2528_v48 = vpop.f32.mrf.mxu0  ;;  %v2381_v63 = vadd.f32 %v3719_v21, %v4984_v24 }
 0x23a   : > { %2587 = vst [vmem:[%s5022_s25 + $0xd8] sm:$0xff] %v2537_v14  ;;  %v2529_v43 = vadd.f32 %v2528_v48, %v2368_v38  ;;  %v2750_v37 = vadd.f32 %v2749_v0, %v2526_v62  ;;  %v2818_v58 = vadd.f32 %v2817_v39, %v2787_v54  ;;  %v3722_v1 = vadd.f32 %v3721_v2, %v3720_v49 }
 0x23b   : > { %v3723_v47 = vpop.f32.mrf.mxu1  ;;  %v3799_v34 = vpop.f32.mrf.mxu0  ;;  %v2791_v51 = vmul.f32 %v2537_v14, %v2537_v14 }
 0x23c   : > { %2585 = vst [vmem:[%s5022_s25 + $0xc8] sm:$0xff] %v2529_v43  ;;  %v2789_v52 = vmul.f32 %v2529_v43, %v2529_v43  ;;  %v2751_v13 = vadd.f32 %v2750_v37, %v2529_v43  ;;  %v2819_v10 = vadd.f32 %v2818_v58, %v2788_v29  ;;  %v2384_v24 = vadd.f32 %v3722_v1, %v5294_v41 }
 0x23d   : > { %v3724_v26 = vpop.f32.mrf.mxu1  ;;  %v2541_v44 = vpop.f32.mrf.mxu0 }
 0x23e   : > { %v3725_v6 = vadd.f32 %v3724_v26, %v3723_v47  ;;  %v2542_v60 = vadd.f32 %v2541_v44, %v2381_v63  ;;  %v2752_v36 = vadd.f32 %v2751_v13, %v2534_v17  ;;  %v2820_v46 = vadd.f32 %v2819_v10, %v2789_v52 }
 0x23f   : > { %v3726_v3 = vpop.f32.mrf.mxu1  ;;  %v3800_v53 = vpop.f32.mrf.mxu0 }
 0x240   : > { %v2389_v9 = vadd.f32 %v3725_v6, %v5293_v5  ;;  %2588 = vst [vmem:[%s5022_s25 + $0xe0] sm:$0xff] %v2542_v60  ;;  %v2753_v35 = vadd.f32 %v2752_v36, %v2537_v14  ;;  %v2821_v40 = vadd.f32 %v2820_v46, %v2790_v7  ;;  %v2792_v18 = vmul.f32 %v2542_v60, %v2542_v60 }
 0x241   : > { %v3727_v19 = vpop.f32.mrf.mxu1  ;;  %v2544_v32 = vpop.f32.mrf.mxu0 }
 0x242   : > { %v2550_v4 = vadd.f32 %v3799_v34, %v2389_v9  ;;  %v3728_v42 = vadd.f32 %v3727_v19, %v3726_v3  ;;  %v2545_v33 = vadd.f32 %v2544_v32, %v2384_v24  ;;  %v2754_v57 = vadd.f32 %v2753_v35, %v2542_v60 }
 0x243   : > { %v2822_v61 = vadd.f32 %v2821_v40, %v2791_v51 }
 0x244   : > { %2590 = vst [vmem:[%s5022_s25 + $0xf0] sm:$0xff] %v2550_v4  ;;  %v2392_v16 = vadd.f32 %v3728_v42, %v5015_v50  ;;  %2589 = vst [vmem:[%s5022_s25 + $0xe8] sm:$0xff] %v2545_v33  ;;  %v2793_v56 = vmul.f32 %v2545_v33, %v2545_v33  ;;  %v2755_v59 = vadd.f32 %v2754_v57, %v2545_v33 }
 0x245   : > { %v2823_v12 = vadd.f32 %v2822_v61, %v2792_v18  ;;  %v2794_v23 = vmul.f32 %v2550_v4, %v2550_v4 }
 0x246   : > { %v2553_v17 = vadd.f32 %v3800_v53, %v2392_v16  ;;  %v2756_v11 = vadd.f32 %v2755_v59, %v2550_v4 }
 0x247   : > { %v2824_v15 = vadd.f32 %v2823_v12, %v2793_v56 }
 0x248   : > { %2591 = vst [vmem:[%s5022_s25 + $0xf8] sm:$0xff] %v2553_v17  ;;  %v2795_v50 = vmul.f32 %v2553_v17, %v2553_v17  ;;  %v2757_v8 = vadd.f32 %v2756_v11, %v2553_v17 }
 0x249   : > { %4256 = shalt.err (!%p4253_p2)
}
 0x24a   : > { %s4257_s11 = scalar_lea.hbm %s5144_s13, 4096  ;;  %s4261_s28 = scalar_lea.hbm %s5263_s2, 16384 }
 0x24b   : > { %p4258_p11 = scmp.ne.s32.totalorder %s5144_s13, %s4257_s11  ;;  %p4262_p3 = scmp.lt.s32.totalorder %s5144_s13, %s5263_s2 }
 0x24c   : > { %p4263_p5 = scmp.lt.s32.totalorder %s4261_s28, %s4257_s11 }
 0x24d   : > { %p4259_p12 = pnand %p4258_p11, %p4501_p0 }
 0x24e   : > { %p4264_p1 = por %p4263_p5, %p4262_p3 }
 0x24f   : > { %p4260_p13 = pneg %p4259_p12 }
 0x251   : > { %p4265_p4 = pnand %p4264_p1, %p4260_p13 }
 0x253   : > { %4268 = shalt.err (!%p4265_p4)
}
 0x254   : > { %s4392_s5 = smov 128   ;;  %s4393_s26 = smov 8   ;;  %v2825_v45 = vadd.f32 %v2824_v15, %v2794_v23  ;;  %v2758_v20 = vrot.slane %v2757_v8, 4 }
 0x255   : > { %3826 = dma.vmem_to_hbm [thread:$0]  (%p4501_p0), %s5146_s30, 4096, %s5144_s13, %s2836_s27, %s4392_s5, %s4392_s5, %s4393_s26  }
 0x256   : > { %v2826_v62 = vadd.f32 %v2825_v45, %v2795_v50  ;;  %s3053_s6 = sshll.u32 %s4527_s12, 3  ;;  %v2759_v22 = vadd.f32 %v2758_v20, %v2757_v8  ;;  %s2840_s9 = sand.u32 1, %s4452_s21  }
 0x257   : > { %s3276_s11 = sshll.u32 %s4375_s18, 7  ;;  %s266_s23 = scalar_lea.vmem [#allocation8], %s3053_s6 }
 0x258   : > { %v2827_v27 = vrot.slane %v2826_v62, 4  ;;  %v2760_v49 = vrot.slane %v2759_v22, 2  ;;  %s2875_s25 = sshll.u32 %s266_s23, 4  ;;  %s5175_s28 = scalar_lea.vmem [#allocation10], %s3053_s6  ;;  %s5183_s25 = int_to_ptr.vmem [resolvable:$true] %s2875_s25 }
 0x259   : > { %s2888_s30 = sshll.u32 %s5175_s28, 4  ;;  %s5181_s27 = scalar_lea.hbm %s5264_s3, %s3276_s11  ;;  %s5190_s30 = int_to_ptr.vmem [resolvable:$true] %s2888_s30 }
 0x25a   : > { %v2828_v30 = vadd.f32 %v2827_v27, %v2826_v62  ;;  %v2761_v55 = vadd.f32 %v2760_v49, %v2759_v22  ;;  %s5188_s7 = scalar_lea.hbm %s5265_s4, %s3276_s11  ;;  %s5192_s8 = scalar_lea.sflag [#allocation9], %s2840_s9 }
 0x25b   : > { %s4269_s5 = scalar_lea.vmem %s5183_s25, 128  ;;  %s4394_s26 = smov [#allocation8]  }
 0x25c   : > { %v2829_v28 = vrot.slane %v2828_v30, 2  ;;  %v2762_v25 = vrot.slane %v2761_v55, 1  ;;  %p4270_p8 = scmp.ne.s32.totalorder %s5183_s25, %s4269_s5  ;;  %s4273_s6 = sshll.u32 %s4394_s26, 4  ;;  %s4274_s6 = int_to_ptr.vmem [resolvable:$false] %s4273_s6 }
 0x25d   : > { %s4275_s13 = scalar_lea.vmem %s4274_s6, 256  ;;  %p4276_p9 = scmp.lt.s32.totalorder %s5183_s25, %s4274_s6 }
 0x25e   : > { %v2830_v21 = vadd.f32 %v2829_v28, %v2828_v30  ;;  %v2763_v14 = vadd.f32 %v2762_v25, %v2761_v55  ;;  %p4271_p10 = pnand %p4270_p8, %p4501_p0  ;;  %p4277_p2 = scmp.lt.s32.totalorder %s4275_s13, %s4269_s5 }
 0x260   : > { %v2831_v31 = vrot.slane %v2830_v21, 1  ;;  %2833 = vst [vmem:[%s266_s23] sm:$0xff] %v2763_v14  ;;  %p4272_p7 = pneg %p4271_p10  ;;  %p4278_p11 = por %p4277_p2, %p4276_p9 }
 0x262   : > { %v2832_v38 = vadd.f32 %v2831_v31, %v2830_v21  ;;  %p4279_p12 = pnand %p4278_p11, %p4272_p7 }
 0x264   : > { %4282 = shalt.err (!%p4279_p12)
}
 0x265   : > { %s4283_s9 = scalar_lea.hbm %s5181_s27, 128  ;;  %s4287_s12 = scalar_lea.hbm %s5264_s3, 512 }
 0x266   : > { %p4284_p13 = scmp.ne.s32.totalorder %s5181_s27, %s4283_s9  ;;  %p4288_p1 = scmp.lt.s32.totalorder %s5181_s27, %s5264_s3 }
 0x267   : > { %p4289_p4 = scmp.lt.s32.totalorder %s4287_s12, %s4283_s9 }
 0x268   : > { %p4285_p3 = pnand %p4284_p13, %p4501_p0 }
 0x269   : > { %p4290_p8 = por %p4289_p4, %p4288_p1 }
 0x26a   : > { %p4286_p5 = pneg %p4285_p3 }
 0x26c   : > { %p4291_p10 = pnand %p4290_p8, %p4286_p5 }
 0x26e   : > { %4294 = shalt.err (!%p4291_p10)
}
 0x26f   : > { %3827 = dma.vmem_to_hbm [thread:$0]  (%p4501_p0), %s5183_s25, 128, %s5181_s27, %s5192_s8   ;;  %2834 = vst [vmem:[%s5175_s28] sm:$0xff] %v2832_v38 }
 0x270   : > { %s4295_s5 = scalar_lea.vmem %s5190_s30, 128  ;;  %s4395_s26 = smov [#allocation10]  }
 0x271   : > { %p4296_p7 = scmp.ne.s32.totalorder %s5190_s30, %s4295_s5  ;;  %s4299_s6 = sshll.u32 %s4395_s26, 4  ;;  %s4300_s6 = int_to_ptr.vmem [resolvable:$false] %s4299_s6 }
 0x272   : > { %s4301_s13 = scalar_lea.vmem %s4300_s6, 256  ;;  %p4302_p11 = scmp.lt.s32.totalorder %s5190_s30, %s4300_s6 }
 0x273   : > { %p4297_p9 = pnand %p4296_p7, %p4501_p0  ;;  %p4303_p12 = scmp.lt.s32.totalorder %s4301_s13, %s4295_s5 }
 0x275   : > { %p4298_p2 = pneg %p4297_p9  ;;  %p4304_p13 = por %p4303_p12, %p4302_p11 }
 0x277   : > { %p4305_p3 = pnand %p4304_p13, %p4298_p2 }
 0x279   : > { %4308 = shalt.err (!%p4305_p3)
}
 0x27a   : > { %s4309_s25 = scalar_lea.hbm %s5188_s7, 128  ;;  %s4313_s9 = scalar_lea.hbm %s5265_s4, 512 }
 0x27b   : > { %p4310_p5 = scmp.ne.s32.totalorder %s5188_s7, %s4309_s25  ;;  %p4314_p8 = scmp.lt.s32.totalorder %s5188_s7, %s5265_s4 }
 0x27c   : > { %p4315_p10 = scmp.lt.s32.totalorder %s4313_s9, %s4309_s25 }
 0x27d   : > { %p4311_p1 = pnand %p4310_p5, %p4501_p0 }
 0x27e   : > { %p4316_p7 = por %p4315_p10, %p4314_p8 }
 0x27f   : > { %p4312_p4 = pneg %p4311_p1 }
 0x281   : > { %p4317_p9 = pnand %p4316_p7, %p4312_p4 }
 0x283   : > { %4320 = shalt.err (!%p4317_p9)
}
 0x284   : > { %3828 = dma.vmem_to_hbm [thread:$0]  (%p4501_p0), %s5190_s30, 128, %s5188_s7, %s5192_s8  }
 0x285 PF: > { %p3853_p2 = scmp.ge.s32.totalorder %s4383_s20, 2  ;;  %s2900_s12 = sand.u32 1, %s4363_s15  }
 0x286   : > { %s2901_s18 = scalar_lea.sflag [#allocation4], %s2900_s12 }
 0x287   : > { %p3841_p11 = pnand %p3853_p2, %p4468_p6 }
 0x289   : > { %p3842_p12 = pneg %p3841_p11 }
 0x28b   : > { %4354 = dma.done.wait (%p3842_p12), %s2901_s18, 4096  }
 0x28c   : > { %4356 = vsyncadd (%p3842_p12), %s2901_s18, 4294963200  ;;  %s2909_s21 = sand.u32 1, %s3043_s22  }
 0x28d   : > { %s2910_s10 = scalar_lea.sflag [#allocation9], %s2909_s21 }
 0x28e   : > { %4358 = dma.done.wait (%p3842_p12), %s2910_s10, 256  }
 0x28f   : > { %4360 = vsyncadd (%p3842_p12), %s2910_s10, 4294967040  ;;  %s25_s20 = sadd.s32 1, %s4383_s20   ;;  %s5295_s15 = smov %s4367_s16 }
 0x290   : > { %p22_p0 = scmp.ge.s32.totalorder %s25_s20, 6   ;;  %s5296_s16 = smov %s4371_s17 }
 0x291   : > { %s5297_s17 = smov %s4510_s14  ;;  %s5298_s18 = smov %s4379_s19 }
 0x292   : > { %s5299_s19 = smov %s5301_s29  ;;  %24 = sbr.rel (!%p22_p0) target bundleno = 9 (0x9), region = 122 }
 0x297   :  { %2924 = vsyncpa [#allocation3], 1 }
 0x298   :  { %2926 = vsyncpa [#allocation3 + $0x1], 1 }
 0x299   :  { %2927 = vsyncpa [#allocation6], 1 }
 0x29a   :  { %2928 = vsyncpa [#allocation4], 1 }
 0x29b   :  { %2930 = vsyncpa [#allocation4 + $0x1], 1 }
 0x29c   :  { %2931 = vsyncpa [#allocation9], 1 }
 0x29d   :  { %2933 = vsyncpa [#allocation9 + $0x1], 1 }

</bundles_post_ra>
